<compile_context>
chip_gen: v7x
topology: tpu7x:2x2x1
jax: 0.10.0
libtpu: 0.0.40
codegen_flags: <defaults>
</compile_context>

<pallas_src>
import functools
import math

import jax
import jax.numpy as jnp
import numpy as np
from jax.experimental import pallas as pl
from jax.experimental.pallas import tpu as pltpu

TM = 256                            # row tile over flattened batch*spatial rows
VMEM_LIMIT_BYTES = 32 * 1024 * 1024  # explicit, safe on v5e/v6e/v7x


# ---------------------------------------------------------------------------
# small helpers
# ---------------------------------------------------------------------------
def _round_up(x, m):
    return (x + m - 1) // m * m


def _tile_rows(m, block_m):
    # Pick a sublane-aligned row tile and the padded row count (never a single
    # giant "tm = M" block).
    tm = block_m if m >= block_m else _round_up(m, 8)
    return tm, _round_up(m, tm)


def _nbytes(a):
    return math.prod(a.shape) * a.dtype.itemsize


def _compiler_params():
    return pltpu.CompilerParams(
        dimension_semantics=("parallel",),
        vmem_limit_bytes=VMEM_LIMIT_BYTES,
    )


# ---------------------------------------------------------------------------
# Pallas kernels
# ---------------------------------------------------------------------------
def _matmul_bn_kernel(x_ref, w_ref, s_ref, b_ref, o_ref, *, relu):
    # conv-as-matmul (bf16 in, f32 accumulate) + fused BN scale/bias + opt ReLU.
    acc = jnp.dot(x_ref[...], w_ref[...], preferred_element_type=jnp.float32)
    y = acc * s_ref[...] + b_ref[...]
    if relu:
        y = jnp.maximum(y, 0.0)
    o_ref[...] = y.astype(o_ref.dtype)


def _conv2_kernel(xp_ref, w_ref, s_ref, b_ref, o_ref, *, kh, kw, ho, wo):
    # Stride-1 conv (stride already folded into channels by space-to-depth).
    # im2col is done in VMEM/vregs: one small matmul per tap, accumulated in
    # f32, epilogue (BN + ReLU) applied once after the final accumulation.
    x = xp_ref[0]                       # (Hs, Ws, Cs) bf16, whole padded image
    cs = x.shape[-1]
    fo = o_ref.shape[-1]
    acc = jnp.zeros((ho * wo, fo), jnp.float32)
    for dh in range(kh):
        for dw in range(kw):
            t = dh * kw + dw
            xt = x[dh:dh + ho, dw:dw + wo, :].reshape(ho * wo, cs)
            wt = w_ref[t * cs:(t + 1) * cs, :]
            acc = acc + jnp.dot(xt, wt, preferred_element_type=jnp.float32)
    y = jnp.maximum(acc * s_ref[...] + b_ref[...], 0.0)
    o_ref[...] = y.reshape(1, ho, wo, fo).astype(o_ref.dtype)


def _conv3_proj_kernel(y2_ref, xs_ref, w3_ref, s3_ref, b3_ref,
                       ws_ref, ss_ref, bs_ref, o_ref):
    # conv3 (1x1) + BN, projection shortcut (1x1 conv + BN), residual add, ReLU.
    r = jnp.dot(y2_ref[...], w3_ref[...], preferred_element_type=jnp.float32)
    r = r * s3_ref[...] + b3_ref[...]
    sc = jnp.dot(xs_ref[...], ws_ref[...], preferred_element_type=jnp.float32)
    sc = sc * ss_ref[...] + bs_ref[...]
    o_ref[...] = jnp.maximum(r + sc, 0.0).astype(o_ref.dtype)


def _conv3_identity_kernel(y2_ref, xsc_ref, w3_ref, s3_ref, b3_ref, o_ref):
    # conv3 (1x1) + BN, identity shortcut, residual add, ReLU.
    r = jnp.dot(y2_ref[...], w3_ref[...], preferred_element_type=jnp.float32)
    r = r * s3_ref[...] + b3_ref[...]
    o_ref[...] = jnp.maximum(r + xsc_ref[...].astype(jnp.float32),
                             0.0).astype(o_ref.dtype)


# ---------------------------------------------------------------------------
# pallas_call wrappers
# ---------------------------------------------------------------------------
def matmul_bn(x2d, w2d, scale, bias, *, relu, out_dtype=jnp.float32,
              block_m=TM):
    M, K = x2d.shape
    n_out = w2d.shape[1]
    tm, Mp = _tile_rows(M, block_m)
    if Mp != M:
        x2d = jnp.pad(x2d, ((0, Mp - M), (0, 0)))
    flops = 2 * Mp * K * n_out
    bytes_accessed = (_nbytes(x2d) + _nbytes(w2d) + _nbytes(scale)
                      + _nbytes(bias) + Mp * n_out * np.dtype(out_dtype).itemsize)
    out = pl.pallas_call(
        functools.partial(_matmul_bn_kernel, relu=relu),
        out_shape=jax.ShapeDtypeStruct((Mp, n_out), out_dtype),
        grid=(Mp // tm,),
        in_specs=[
            pl.BlockSpec((tm, K), lambda i: (i, 0)),
            pl.BlockSpec((K, n_out), lambda i: (0, 0)),
            pl.BlockSpec((1, n_out), lambda i: (0, 0)),
            pl.BlockSpec((1, n_out), lambda i: (0, 0)),
        ],
        out_specs=pl.BlockSpec((tm, n_out), lambda i: (i, 0)),
        compiler_params=_compiler_params(),
        cost_estimate=pl.CostEstimate(flops=int(flops), transcendentals=0,
                                      bytes_accessed=int(bytes_accessed)),
    )(x2d, w2d, scale, bias)
    return out[:M] if Mp != M else out


def conv2_s2d(xs2d, w2p, scale, bias, Ho, Wo, khp, kwp):
    # xs2d: (N, Hs, Ws, Cs) bf16 space-to-depth'd padded input.
    N, Hs, Ws_, Cs = xs2d.shape
    K, n_out = w2p.shape
    kernel = functools.partial(_conv2_kernel, kh=khp, kw=kwp, ho=Ho, wo=Wo)
    flops = 2 * N * Ho * Wo * K * n_out
    bytes_accessed = (_nbytes(xs2d) + _nbytes(w2p) + _nbytes(scale)
                      + _nbytes(bias) + N * Ho * Wo * n_out * 2)
    return pl.pallas_call(
        kernel,
        out_shape=jax.ShapeDtypeStruct((N, Ho, Wo, n_out), jnp.bfloat16),
        grid=(N,),
        in_specs=[
            pl.BlockSpec((1, Hs, Ws_, Cs), lambda n: (n, 0, 0, 0)),
            pl.BlockSpec((K, n_out), lambda n: (0, 0)),
            pl.BlockSpec((1, n_out), lambda n: (0, 0)),
            pl.BlockSpec((1, n_out), lambda n: (0, 0)),
        ],
        out_specs=pl.BlockSpec((1, Ho, Wo, n_out), lambda n: (n, 0, 0, 0)),
        compiler_params=_compiler_params(),
        cost_estimate=pl.CostEstimate(flops=int(flops), transcendentals=0,
                                      bytes_accessed=int(bytes_accessed)),
    )(xs2d, w2p, scale, bias)


def conv3_fused(y2, sc, w3, s3, b3, ws=None, ss=None, bs=None, *, block_m=TM):
    M, K3 = y2.shape
    c4 = w3.shape[1]
    csc = sc.shape[1]
    tm, Mp = _tile_rows(M, block_m)
    if Mp != M:
        y2 = jnp.pad(y2, ((0, Mp - M), (0, 0)))
        sc = jnp.pad(sc, ((0, Mp - M), (0, 0)))

    def row(k):
        return pl.BlockSpec((tm, k), lambda i: (i, 0))

    def rep(a):
        return pl.BlockSpec(a.shape, lambda i: (0, 0))

    if ws is not None:
        kernel = _conv3_proj_kernel
        args = (y2, sc, w3, s3, b3, ws, ss, bs)
        in_specs = [row(K3), row(csc), rep(w3), rep(s3), rep(b3),
                    rep(ws), rep(ss), rep(bs)]
        flops = 2 * Mp * (K3 + csc) * c4
    else:
        kernel = _conv3_identity_kernel
        args = (y2, sc, w3, s3, b3)
        in_specs = [row(K3), row(csc), rep(w3), rep(s3), rep(b3)]
        flops = 2 * Mp * K3 * c4
    bytes_accessed = sum(_nbytes(a) for a in args) + Mp * c4 * 4
    out = pl.pallas_call(
        kernel,
        out_shape=jax.ShapeDtypeStruct((Mp, c4), jnp.float32),
        grid=(Mp // tm,),
        in_specs=in_specs,
        out_specs=pl.BlockSpec((tm, c4), lambda i: (i, 0)),
        compiler_params=_compiler_params(),
        cost_estimate=pl.CostEstimate(flops=int(flops), transcendentals=0,
                                      bytes_accessed=int(bytes_accessed)),
    )(*args)
    return out[:M] if Mp != M else out


# ---------------------------------------------------------------------------
# Plain-JAX glue (layout-only work; no extra compute passes)
# ---------------------------------------------------------------------------
def fold_bn(gamma, beta, mean, var, eps=1e-5):
    scale = gamma / jnp.sqrt(var + eps)
    bias = beta - mean * scale
    return scale.reshape(1, -1), bias.reshape(1, -1)


def build_conv2_weight(w2_oihw, stride):
    # (F, C, 3, 3) PyTorch layout -> stride-folded weight (khp*kwp*s*s*C, F).
    n_out, c_in = w2_oihw.shape[0], w2_oihw.shape[1]
    s = stride
    khp = -(-3 // s)           # ceil(3 / stride)
    kwp = khp
    w = jnp.transpose(w2_oihw, (2, 3, 1, 0))          # (3, 3, C, F)
    wp = jnp.zeros((khp, kwp, s, s, c_in, n_out), w.dtype)
    for dhh in range(3):
        for dww in range(3):
            wp = wp.at[dhh // s, dww // s, dhh % s, dww % s].set(w[dhh, dww])
    return wp.reshape(khp * kwp * s * s * c_in, n_out), khp, kwp


def space_to_depth_pad(y, stride, khp, kwp):
    # Pad for the 3x3 conv (pad=1) and fold the stride into the channel dim so
    # the Pallas kernel only sees a stride-1 conv.  Pure layout work.
    N, H, W, C = y.shape
    s = stride
    Ho = (H + 2 - 3) // s + 1
    Wo = (W + 2 - 3) // s + 1
    Hs = Ho + khp - 1
    Ws_ = Wo + kwp - 1
    Hp, Wp = Hs * s, Ws_ * s
    yp = jnp.pad(y, ((0, 0), (1, Hp - H - 1), (1, Wp - W - 1), (0, 0)))
    yp = yp.reshape(N, Hs, s, Ws_, s, C)
    yp = jnp.transpose(yp, (0, 1, 3, 2, 4, 5))
    return yp.reshape(N, Hs, Ws_, s * s * C), Ho, Wo


def init_params(key, in_c, out_c, stride):
    c4 = out_c * 4
    keys = jax.random.split(key, 12)

    def conv_w(k, shape):  # PyTorch layout (Cout, Cin, kh, kw)
        fan_in = shape[1] * shape[2] * shape[3]
        return jax.random.normal(k, shape, jnp.float32) * (fan_in ** -0.5)

    def bn_p(kg, kb, c):
        gamma = 1.0 + 0.1 * jax.random.normal(kg, (c,), jnp.float32)
        beta = 0.1 * jax.random.normal(kb, (c,), jnp.float32)
        mean = jnp.zeros((c,), jnp.float32)
        var = jnp.ones((c,), jnp.float32)
        return (gamma, beta, mean, var)

    p = {
        "w1": conv_w(keys[0], (out_c, in_c, 1, 1)),
        "w2": conv_w(keys[1], (out_c, out_c, 3, 3)),
        "w3": conv_w(keys[2], (c4, out_c, 1, 1)),
        "bn1": bn_p(keys[3], keys[4], out_c),
        "bn2": bn_p(keys[5], keys[6], out_c),
        "bn3": bn_p(keys[7], keys[8], c4),
    }
    if stride != 1 or in_c != c4:
        p["ws"] = conv_w(keys[9], (c4, in_c, 1, 1))
        p["bns"] = bn_p(keys[10], keys[11], c4)
    return p


def bottleneck_forward(params, x_nchw, out_c, stride):
    x = jnp.transpose(x_nchw, (0, 2, 3, 1)).astype(jnp.float32)  # NCHW -> NHWC
    N, H, W, C = x.shape
    c4 = out_c * 4

    # conv1 1x1 + BN + ReLU (bf16 matmul, bf16 activation out)
    w1 = params["w1"][:, :, 0, 0].T.astype(jnp.bfloat16)          # (Cin, out_c)
    s1, b1 = fold_bn(*params["bn1"])
    y1 = matmul_bn(x.reshape(N * H * W, C).astype(jnp.bfloat16), w1, s1, b1,
                   relu=True, out_dtype=jnp.bfloat16)
    y1 = y1.reshape(N, H, W, out_c)

    # conv2 3x3 (stride, pad=1) + BN + ReLU — stride folded via space-to-depth,
    # im2col + accumulation performed inside the kernel (no HBM patch tensor)
    w2p, khp, kwp = build_conv2_weight(params["w2"], stride)
    s2, b2 = fold_bn(*params["bn2"])
    xs2d, Ho, Wo = space_to_depth_pad(y1, stride, khp, kwp)
    y2 = conv2_s2d(xs2d.astype(jnp.bfloat16), w2p.astype(jnp.bfloat16),
                   s2, b2, Ho, Wo, khp, kwp)                      # (N,Ho,Wo,out_c)
    y2 = y2.reshape(N * Ho * Wo, out_c)

    # conv3 1x1 + BN + shortcut (+ BN) + residual add + ReLU, all fused
    w3 = params["w3"][:, :, 0, 0].T.astype(jnp.bfloat16)          # (out_c, c4)
    s3, b3 = fold_bn(*params["bn3"])
    if "ws" in params:
        ws = params["ws"][:, :, 0, 0].T.astype(jnp.bfloat16)      # (Cin, c4)
        ss, bs = fold_bn(*params["bns"])
        xs = x[:, ::stride, ::stride, :].reshape(N * Ho * Wo, C)
        out = conv3_fused(y2, xs.astype(jnp.bfloat16), w3, s3, b3, ws, ss, bs)
    else:
        out = conv3_fused(y2, x.reshape(N * H * W, C), w3, s3, b3)

    out = out.reshape(N, Ho, Wo, c4)
    return jnp.transpose(out, (0, 3, 1, 2))                       # NHWC -> NCHW


# ---------------------------------------------------------------------------
# Pure-JAX reference (mirrors the PyTorch module, BN in eval mode)
# ---------------------------------------------------------------------------
def reference_forward(params, x, stride, eps=1e-5):
    def conv(x, w, s, padding):
        return jax.lax.conv_general_dilated(
            x, w, (s, s), padding,
            dimension_numbers=("NCHW", "OIHW", "NCHW"),
            precision=jax.lax.Precision.HIGHEST)

    def bn(x, p):
        g, b, m, v = p
        sc = g / jnp.sqrt(v + eps)
        return x * sc[None, :, None, None] + (b - m * sc)[None, :, None, None]

    y = jnp.maximum(bn(conv(x, params["w1"], 1, "VALID"), params["bn1"]), 0.0)
    y = jnp.maximum(bn(conv(y, params["w2"], stride, [(1, 1), (1, 1)]),
                       params["bn2"]), 0.0)
    y = bn(conv(y, params["w3"], 1, "VALID"), params["bn3"])
    if "ws" in params:
        sc = bn(conv(x, params["ws"], stride, "VALID"), params["bns"])
    else:
        sc = x
    return jnp.maximum(y + sc, 0.0)


if __name__ == "__main__":
    in_channels, out_channels, stride = 4, 4, 2
    batch, spatial = 2, 16

    key = jax.random.PRNGKey(0)
    k_x, k_p = jax.random.split(key)
    x = jax.random.normal(k_x, (batch, in_channels, spatial, spatial),
                          jnp.float32)
    params = init_params(k_p, in_channels, out_channels, stride)

    fwd = jax.jit(functools.partial(bottleneck_forward, out_c=out_channels,
                                    stride=stride))
    out = fwd(params, x)
    out = jax.block_until_ready(out)

    ref = reference_forward(params, x, stride)
    assert out.shape == ref.shape, (out.shape, ref.shape)
    # Tolerance reflects deliberate bf16 operands (f32 accumulation) in the
    # MXU matmuls vs. the f32 HIGHEST-precision reference.
    assert jnp.allclose(out, ref, rtol=2e-2, atol=2e-2), "mismatch vs reference"

    print("KERNEL_OK")
</pallas_src>

<mosaic_0001>
module attributes {stable_mosaic.version = 11 : i64} {
  func.func @_matmul_bn_kernel(%arg0: i32, %arg1: memref<256x4xbf16, #tpu.memory_space<vmem>>, %arg2: memref<4x4xbf16, #tpu.memory_space<vmem>>, %arg3: memref<1x4xf32, #tpu.memory_space<vmem>>, %arg4: memref<1x4xf32, #tpu.memory_space<vmem>>, %arg5: memref<256x4xbf16, #tpu.memory_space<vmem>>) attributes {dimension_semantics = [#tpu.dimension_semantics<parallel>], iteration_bounds = array<i64: 2>, scalar_prefetch = 0 : i64, scratch_operands = 0 : i64, tpu.core_type = #tpu.core_type<tc>, window_params = [{transform_indices = @transform_0, window_bounds = array<i64: 256, 4>}, {pipeline_mode = #tpu.pipeline_mode<synchronous>, transform_indices = @transform_1, window_bounds = array<i64: 4, 4>}, {pipeline_mode = #tpu.pipeline_mode<synchronous>, transform_indices = @transform_2, window_bounds = array<i64: 1, 4>}, {pipeline_mode = #tpu.pipeline_mode<synchronous>, transform_indices = @transform_3, window_bounds = array<i64: 1, 4>}, {transform_indices = @transform_4, window_bounds = array<i64: 256, 4>}]} {
    %c0 = arith.constant 0 : index
    %c0_0 = arith.constant 0 : index
    %0 = vector.load %arg1[%c0, %c0_0] : memref<256x4xbf16, #tpu.memory_space<vmem>>, vector<256x4xbf16>
    %c0_1 = arith.constant 0 : index
    %c0_2 = arith.constant 0 : index
    %1 = vector.load %arg2[%c0_1, %c0_2] : memref<4x4xbf16, #tpu.memory_space<vmem>>, vector<4x4xbf16>
    %cst = arith.constant dense<0.000000e+00> : vector<256x4xf32>
    %2 = tpu.matmul %0, %1, %cst {dimension_numbers = #tpu.dot_dimension_numbers<[1], [0], [0], [1], [0, 0, 1, 1], [], []>} : vector<256x4xbf16>, vector<4x4xbf16>, vector<256x4xf32> -> vector<256x4xf32>
    %c0_3 = arith.constant 0 : index
    %c0_4 = arith.constant 0 : index
    %3 = vector.load %arg3[%c0_3, %c0_4] : memref<1x4xf32, #tpu.memory_space<vmem>>, vector<1x4xf32>
    %4 = vector.broadcast %3 : vector<1x4xf32> to vector<256x4xf32>
    %5 = arith.mulf %2, %4 : vector<256x4xf32>
    %c0_5 = arith.constant 0 : index
    %c0_6 = arith.constant 0 : index
    %6 = vector.load %arg4[%c0_5, %c0_6] : memref<1x4xf32, #tpu.memory_space<vmem>>, vector<1x4xf32>
    %7 = vector.broadcast %6 : vector<1x4xf32> to vector<256x4xf32>
    %8 = arith.addf %5, %7 : vector<256x4xf32>
    %cst_7 = arith.constant 0.000000e+00 : f32
    %9 = vector.broadcast %cst_7 : f32 to vector<256x4xf32>
    %10 = arith.maximumf %8, %9 : vector<256x4xf32>
    %11 = arith.truncf %10 : vector<256x4xf32> to vector<256x4xbf16>
    %c0_8 = arith.constant 0 : index
    %c0_9 = arith.constant 0 : index
    %12 = vector.load %arg5[%c0_8, %c0_9] : memref<256x4xbf16, #tpu.memory_space<vmem>>, vector<256x4xbf16>
    tpu.vector_store %arg5[%c0_8, %c0_9], %11 {strides = array<i32>} : memref<256x4xbf16, #tpu.memory_space<vmem>>, vector<256x4xbf16>,
    return
  }
  func.func @transform_0(%arg0: i32) -> (i32, i32) {
    %c0_i32 = arith.constant 0 : i32
    %c0_i32_0 = arith.constant 0 : i32
    return %arg0, %c0_i32 : i32, i32
  }
  func.func @transform_1(%arg0: i32) -> (i32, i32) {
    %c0_i32 = arith.constant 0 : i32
    %c0_i32_0 = arith.constant 0 : i32
    %c0_i32_1 = arith.constant 0 : i32
    return %c0_i32, %c0_i32_0 : i32, i32
  }
  func.func @transform_2(%arg0: i32) -> (i32, i32) {
    %c0_i32 = arith.constant 0 : i32
    %c0_i32_0 = arith.constant 0 : i32
    %c0_i32_1 = arith.constant 0 : i32
    return %c0_i32, %c0_i32_0 : i32, i32
  }
  func.func @transform_3(%arg0: i32) -> (i32, i32) {
    %c0_i32 = arith.constant 0 : i32
    %c0_i32_0 = arith.constant 0 : i32
    %c0_i32_1 = arith.constant 0 : i32
    return %c0_i32, %c0_i32_0 : i32, i32
  }
  func.func @transform_4(%arg0: i32) -> (i32, i32) {
    %c0_i32 = arith.constant 0 : i32
    %c0_i32_0 = arith.constant 0 : i32
    return %arg0, %c0_i32 : i32, i32
  }
}

module attributes {stable_mosaic.version = 11 : i64} {
  func.func @_conv2_kernel(%arg0: i32, %arg1: memref<1x9x9x16xbf16, #tpu.memory_space<vmem>>, %arg2: memref<64x4xbf16, #tpu.memory_space<vmem>>, %arg3: memref<1x4xf32, #tpu.memory_space<vmem>>, %arg4: memref<1x4xf32, #tpu.memory_space<vmem>>, %arg5: memref<1x8x8x4xbf16, #tpu.memory_space<vmem>>) attributes {dimension_semantics = [#tpu.dimension_semantics<parallel>], iteration_bounds = array<i64: 2>, scalar_prefetch = 0 : i64, scratch_operands = 0 : i64, tpu.core_type = #tpu.core_type<tc>, window_params = [{transform_indices = @transform_0, window_bounds = array<i64: 1, 9, 9, 16>}, {pipeline_mode = #tpu.pipeline_mode<synchronous>, transform_indices = @transform_1, window_bounds = array<i64: 64, 4>}, {pipeline_mode = #tpu.pipeline_mode<synchronous>, transform_indices = @transform_2, window_bounds = array<i64: 1, 4>}, {pipeline_mode = #tpu.pipeline_mode<synchronous>, transform_indices = @transform_3, window_bounds = array<i64: 1, 4>}, {transform_indices = @transform_4, window_bounds = array<i64: 1, 8, 8, 4>}]} {
    %c0 = arith.constant 0 : index
    %c0_0 = arith.constant 0 : index
    %c0_1 = arith.constant 0 : index
    %c0_2 = arith.constant 0 : index
    %0 = vector.load %arg1[%c0, %c0_0, %c0_1, %c0_2] : memref<1x9x9x16xbf16, #tpu.memory_space<vmem>>, vector<1x9x9x16xbf16>
    %1 = vector.shape_cast %0 : vector<1x9x9x16xbf16> to vector<9x9x16xbf16>
    %cst = arith.constant 0.000000e+00 : f32
    %2 = vector.broadcast %cst : f32 to vector<64x4xf32>
    %3 = vector.extract_strided_slice %1 {offsets = [0, 0, 0], sizes = [8, 8, 16], strides = [1, 1, 1]} : vector<9x9x16xbf16> to vector<8x8x16xbf16>
    %4 = vector.shape_cast %3 : vector<8x8x16xbf16> to vector<64x16xbf16>
    %c0_3 = arith.constant 0 : index
    %c0_4 = arith.constant 0 : index
    %5 = vector.load %arg2[%c0_3, %c0_4] : memref<64x4xbf16, #tpu.memory_space<vmem>>, vector<16x4xbf16>
    %cst_5 = arith.constant dense<0.000000e+00> : vector<64x4xf32>
    %6 = tpu.matmul %4, %5, %cst_5 {dimension_numbers = #tpu.dot_dimension_numbers<[1], [0], [0], [1], [0, 0, 1, 1], [], []>} : vector<64x16xbf16>, vector<16x4xbf16>, vector<64x4xf32> -> vector<64x4xf32>
    %7 = arith.addf %2, %6 : vector<64x4xf32>
    %8 = vector.extract_strided_slice %1 {offsets = [0, 1, 0], sizes = [8, 8, 16], strides = [1, 1, 1]} : vector<9x9x16xbf16> to vector<8x8x16xbf16>
    %9 = vector.shape_cast %8 : vector<8x8x16xbf16> to vector<64x16xbf16>
    %c16 = arith.constant 16 : index
    %c0_6 = arith.constant 0 : index
    %10 = vector.load %arg2[%c16, %c0_6] : memref<64x4xbf16, #tpu.memory_space<vmem>>, vector<16x4xbf16>
    %cst_7 = arith.constant dense<0.000000e+00> : vector<64x4xf32>
    %11 = tpu.matmul %9, %10, %cst_7 {dimension_numbers = #tpu.dot_dimension_numbers<[1], [0], [0], [1], [0, 0, 1, 1], [], []>} : vector<64x16xbf16>, vector<16x4xbf16>, vector<64x4xf32> -> vector<64x4xf32>
    %12 = arith.addf %7, %11 : vector<64x4xf32>
    %13 = vector.extract_strided_slice %1 {offsets = [1, 0, 0], sizes = [8, 8, 16], strides = [1, 1, 1]} : vector<9x9x16xbf16> to vector<8x8x16xbf16>
    %14 = vector.shape_cast %13 : vector<8x8x16xbf16> to vector<64x16xbf16>
    %c32 = arith.constant 32 : index
    %c0_8 = arith.constant 0 : index
    %15 = vector.load %arg2[%c32, %c0_8] : memref<64x4xbf16, #tpu.memory_space<vmem>>, vector<16x4xbf16>
    %cst_9 = arith.constant dense<0.000000e+00> : vector<64x4xf32>
    %16 = tpu.matmul %14, %15, %cst_9 {dimension_numbers = #tpu.dot_dimension_numbers<[1], [0], [0], [1], [0, 0, 1, 1], [], []>} : vector<64x16xbf16>, vector<16x4xbf16>, vector<64x4xf32> -> vector<64x4xf32>
    %17 = arith.addf %12, %16 : vector<64x4xf32>
    %18 = vector.extract_strided_slice %1 {offsets = [1, 1, 0], sizes = [8, 8, 16], strides = [1, 1, 1]} : vector<9x9x16xbf16> to vector<8x8x16xbf16>
    %19 = vector.shape_cast %18 : vector<8x8x16xbf16> to vector<64x16xbf16>
    %c48 = arith.constant 48 : index
    %c0_10 = arith.constant 0 : index
    %20 = vector.load %arg2[%c48, %c0_10] : memref<64x4xbf16, #tpu.memory_space<vmem>>, vector<16x4xbf16>
    %cst_11 = arith.constant dense<0.000000e+00> : vector<64x4xf32>
    %21 = tpu.matmul %19, %20, %cst_11 {dimension_numbers = #tpu.dot_dimension_numbers<[1], [0], [0], [1], [0, 0, 1, 1], [], []>} : vector<64x16xbf16>, vector<16x4xbf16>, vector<64x4xf32> -> vector<64x4xf32>
    %22 = arith.addf %17, %21 : vector<64x4xf32>
    %c0_12 = arith.constant 0 : index
    %c0_13 = arith.constant 0 : index
    %23 = vector.load %arg3[%c0_12, %c0_13] : memref<1x4xf32, #tpu.memory_space<vmem>>, vector<1x4xf32>
    %24 = vector.broadcast %23 : vector<1x4xf32> to vector<64x4xf32>
    %25 = arith.mulf %22, %24 : vector<64x4xf32>
    %c0_14 = arith.constant 0 : index
    %c0_15 = arith.constant 0 : index
    %26 = vector.load %arg4[%c0_14, %c0_15] : memref<1x4xf32, #tpu.memory_space<vmem>>, vector<1x4xf32>
    %27 = vector.broadcast %26 : vector<1x4xf32> to vector<64x4xf32>
    %28 = arith.addf %25, %27 : vector<64x4xf32>
    %cst_16 = arith.constant 0.000000e+00 : f32
    %29 = vector.broadcast %cst_16 : f32 to vector<64x4xf32>
    %30 = arith.maximumf %28, %29 : vector<64x4xf32>
    %31 = vector.shape_cast %30 : vector<64x4xf32> to vector<1x8x8x4xf32>
    %32 = arith.truncf %31 : vector<1x8x8x4xf32> to vector<1x8x8x4xbf16>
    %c0_17 = arith.constant 0 : index
    %c0_18 = arith.constant 0 : index
    %c0_19 = arith.constant 0 : index
    %c0_20 = arith.constant 0 : index
    %33 = vector.load %arg5[%c0_17, %c0_18, %c0_19, %c0_20] : memref<1x8x8x4xbf16, #tpu.memory_space<vmem>>, vector<1x8x8x4xbf16>
    tpu.vector_store %arg5[%c0_17, %c0_18, %c0_19, %c0_20], %32 {strides = array<i32>} : memref<1x8x8x4xbf16, #tpu.memory_space<vmem>>, vector<1x8x8x4xbf16>,
    return
  }
  func.func @transform_0(%arg0: i32) -> (i32, i32, i32, i32) {
    %c0_i32 = arith.constant 0 : i32
    %c0_i32_0 = arith.constant 0 : i32
    %c0_i32_1 = arith.constant 0 : i32
    %c0_i32_2 = arith.constant 0 : i32
    return %arg0, %c0_i32, %c0_i32_0, %c0_i32_1 : i32, i32, i32, i32
  }
  func.func @transform_1(%arg0: i32) -> (i32, i32) {
    %c0_i32 = arith.constant 0 : i32
    %c0_i32_0 = arith.constant 0 : i32
    %c0_i32_1 = arith.constant 0 : i32
    return %c0_i32, %c0_i32_0 : i32, i32
  }
  func.func @transform_2(%arg0: i32) -> (i32, i32) {
    %c0_i32 = arith.constant 0 : i32
    %c0_i32_0 = arith.constant 0 : i32
    %c0_i32_1 = arith.constant 0 : i32
    return %c0_i32, %c0_i32_0 : i32, i32
  }
  func.func @transform_3(%arg0: i32) -> (i32, i32) {
    %c0_i32 = arith.constant 0 : i32
    %c0_i32_0 = arith.constant 0 : i32
    %c0_i32_1 = arith.constant 0 : i32
    return %c0_i32, %c0_i32_0 : i32, i32
  }
  func.func @transform_4(%arg0: i32) -> (i32, i32, i32, i32) {
    %c0_i32 = arith.constant 0 : i32
    %c0_i32_0 = arith.constant 0 : i32
    %c0_i32_1 = arith.constant 0 : i32
    %c0_i32_2 = arith.constant 0 : i32
    return %arg0, %c0_i32, %c0_i32_0, %c0_i32_1 : i32, i32, i32, i32
  }
}

module attributes {stable_mosaic.version = 11 : i64} {
  func.func @_conv3_proj_kernel(%arg0: i32, %arg1: memref<128x4xbf16, #tpu.memory_space<vmem>>, %arg2: memref<128x4xbf16, #tpu.memory_space<vmem>>, %arg3: memref<4x16xbf16, #tpu.memory_space<vmem>>, %arg4: memref<1x16xf32, #tpu.memory_space<vmem>>, %arg5: memref<1x16xf32, #tpu.memory_space<vmem>>, %arg6: memref<4x16xbf16, #tpu.memory_space<vmem>>, %arg7: memref<1x16xf32, #tpu.memory_space<vmem>>, %arg8: memref<1x16xf32, #tpu.memory_space<vmem>>, %arg9: memref<128x16xf32, #tpu.memory_space<vmem>>) attributes {dimension_semantics = [#tpu.dimension_semantics<parallel>], iteration_bounds = array<i64: 1>, scalar_prefetch = 0 : i64, scratch_operands = 0 : i64, tpu.core_type = #tpu.core_type<tc>, window_params = [{transform_indices = @transform_0, window_bounds = array<i64: 128, 4>}, {transform_indices = @transform_1, window_bounds = array<i64: 128, 4>}, {pipeline_mode = #tpu.pipeline_mode<synchronous>, transform_indices = @transform_2, window_bounds = array<i64: 4, 16>}, {pipeline_mode = #tpu.pipeline_mode<synchronous>, transform_indices = @transform_3, window_bounds = array<i64: 1, 16>}, {pipeline_mode = #tpu.pipeline_mode<synchronous>, transform_indices = @transform_4, window_bounds = array<i64: 1, 16>}, {pipeline_mode = #tpu.pipeline_mode<synchronous>, transform_indices = @transform_5, window_bounds = array<i64: 4, 16>}, {pipeline_mode = #tpu.pipeline_mode<synchronous>, transform_indices = @transform_6, window_bounds = array<i64: 1, 16>}, {pipeline_mode = #tpu.pipeline_mode<synchronous>, transform_indices = @transform_7, window_bounds = array<i64: 1, 16>}, {transform_indices = @transform_8, window_bounds = array<i64: 128, 16>}]} {
    %c0 = arith.constant 0 : index
    %c0_0 = arith.constant 0 : index
    %0 = vector.load %arg1[%c0, %c0_0] : memref<128x4xbf16, #tpu.memory_space<vmem>>, vector<128x4xbf16>
    %c0_1 = arith.constant 0 : index
    %c0_2 = arith.constant 0 : index
    %1 = vector.load %arg3[%c0_1, %c0_2] : memref<4x16xbf16, #tpu.memory_space<vmem>>, vector<4x16xbf16>
    %cst = arith.constant dense<0.000000e+00> : vector<128x16xf32>
    %2 = tpu.matmul %0, %1, %cst {dimension_numbers = #tpu.dot_dimension_numbers<[1], [0], [0], [1], [0, 0, 1, 1], [], []>} : vector<128x4xbf16>, vector<4x16xbf16>, vector<128x16xf32> -> vector<128x16xf32>
    %c0_3 = arith.constant 0 : index
    %c0_4 = arith.constant 0 : index
    %3 = vector.load %arg4[%c0_3, %c0_4] : memref<1x16xf32, #tpu.memory_space<vmem>>, vector<1x16xf32>
    %4 = vector.broadcast %3 : vector<1x16xf32> to vector<128x16xf32>
    %5 = arith.mulf %2, %4 : vector<128x16xf32>
    %c0_5 = arith.constant 0 : index
    %c0_6 = arith.constant 0 : index
    %6 = vector.load %arg5[%c0_5, %c0_6] : memref<1x16xf32, #tpu.memory_space<vmem>>, vector<1x16xf32>
    %7 = vector.broadcast %6 : vector<1x16xf32> to vector<128x16xf32>
    %8 = arith.addf %5, %7 : vector<128x16xf32>
    %c0_7 = arith.constant 0 : index
    %c0_8 = arith.constant 0 : index
    %9 = vector.load %arg2[%c0_7, %c0_8] : memref<128x4xbf16, #tpu.memory_space<vmem>>, vector<128x4xbf16>
    %c0_9 = arith.constant 0 : index
    %c0_10 = arith.constant 0 : index
    %10 = vector.load %arg6[%c0_9, %c0_10] : memref<4x16xbf16, #tpu.memory_space<vmem>>, vector<4x16xbf16>
    %cst_11 = arith.constant dense<0.000000e+00> : vector<128x16xf32>
    %11 = tpu.matmul %9, %10, %cst_11 {dimension_numbers = #tpu.dot_dimension_numbers<[1], [0], [0], [1], [0, 0, 1, 1], [], []>} : vector<128x4xbf16>, vector<4x16xbf16>, vector<128x16xf32> -> vector<128x16xf32>
    %c0_12 = arith.constant 0 : index
    %c0_13 = arith.constant 0 : index
    %12 = vector.load %arg7[%c0_12, %c0_13] : memref<1x16xf32, #tpu.memory_space<vmem>>, vector<1x16xf32>
    %13 = vector.broadcast %12 : vector<1x16xf32> to vector<128x16xf32>
    %14 = arith.mulf %11, %13 : vector<128x16xf32>
    %c0_14 = arith.constant 0 : index
    %c0_15 = arith.constant 0 : index
    %15 = vector.load %arg8[%c0_14, %c0_15] : memref<1x16xf32, #tpu.memory_space<vmem>>, vector<1x16xf32>
    %16 = vector.broadcast %15 : vector<1x16xf32> to vector<128x16xf32>
    %17 = arith.addf %14, %16 : vector<128x16xf32>
    %18 = arith.addf %8, %17 : vector<128x16xf32>
    %cst_16 = arith.constant 0.000000e+00 : f32
    %19 = vector.broadcast %cst_16 : f32 to vector<128x16xf32>
    %20 = arith.maximumf %18, %19 : vector<128x16xf32>
    %c0_17 = arith.constant 0 : index
    %c0_18 = arith.constant 0 : index
    %21 = vector.load %arg9[%c0_17, %c0_18] : memref<128x16xf32, #tpu.memory_space<vmem>>, vector<128x16xf32>
    tpu.vector_store %arg9[%c0_17, %c0_18], %20 {strides = array<i32>} : memref<128x16xf32, #tpu.memory_space<vmem>>, vector<128x16xf32>,
    return
  }
  func.func @transform_0(%arg0: i32) -> (i32, i32) {
    %c0_i32 = arith.constant 0 : i32
    %c0_i32_0 = arith.constant 0 : i32
    return %arg0, %c0_i32 : i32, i32
  }
  func.func @transform_1(%arg0: i32) -> (i32, i32) {
    %c0_i32 = arith.constant 0 : i32
    %c0_i32_0 = arith.constant 0 : i32
    return %arg0, %c0_i32 : i32, i32
  }
  func.func @transform_2(%arg0: i32) -> (i32, i32) {
    %c0_i32 = arith.constant 0 : i32
    %c0_i32_0 = arith.constant 0 : i32
    %c0_i32_1 = arith.constant 0 : i32
    return %c0_i32, %c0_i32_0 : i32, i32
  }
  func.func @transform_3(%arg0: i32) -> (i32, i32) {
    %c0_i32 = arith.constant 0 : i32
    %c0_i32_0 = arith.constant 0 : i32
    %c0_i32_1 = arith.constant 0 : i32
    return %c0_i32, %c0_i32_0 : i32, i32
  }
  func.func @transform_4(%arg0: i32) -> (i32, i32) {
    %c0_i32 = arith.constant 0 : i32
    %c0_i32_0 = arith.constant 0 : i32
    %c0_i32_1 = arith.constant 0 : i32
    return %c0_i32, %c0_i32_0 : i32, i32
  }
  func.func @transform_5(%arg0: i32) -> (i32, i32) {
    %c0_i32 = arith.constant 0 : i32
    %c0_i32_0 = arith.constant 0 : i32
    %c0_i32_1 = arith.constant 0 : i32
    return %c0_i32, %c0_i32_0 : i32, i32
  }
  func.func @transform_6(%arg0: i32) -> (i32, i32) {
    %c0_i32 = arith.constant 0 : i32
    %c0_i32_0 = arith.constant 0 : i32
    %c0_i32_1 = arith.constant 0 : i32
    return %c0_i32, %c0_i32_0 : i32, i32
  }
  func.func @transform_7(%arg0: i32) -> (i32, i32) {
    %c0_i32 = arith.constant 0 : i32
    %c0_i32_0 = arith.constant 0 : i32
    %c0_i32_1 = arith.constant 0 : i32
    return %c0_i32, %c0_i32_0 : i32, i32
  }
  func.func @transform_8(%arg0: i32) -> (i32, i32) {
    %c0_i32 = arith.constant 0 : i32
    %c0_i32_0 = arith.constant 0 : i32
    return %arg0, %c0_i32 : i32, i32
  }
}

</mosaic_0001>

<bundles_post_ra>
// kernel: bottleneck_forward.3
= control target key start
LH: loop header
LB: loop body
LE: loop exit
PB: predicated region body
PF: predicated region fallthrough
CT: control target
= control target key end

     0   :  { %s1077_s15 = smov 0   ;;  %s1278_s0 = inlined_call_operand.vmem [shape: bf16[512,4], index: 0, kind: input, shape index: {}]   ;;  %s1279_s1 = inlined_call_operand.vmem [shape: bf16[4,4], index: 1, kind: input, shape index: {}]   ;;  %s1280_s2 = inlined_call_operand.vmem [shape: f32[1,4], index: 2, kind: input, shape index: {}]   ;;  %s1281_s3 = inlined_call_operand.vmem [shape: f32[1,4], index: 3, kind: input, shape index: {}]   ;;  %s1282_s4 = inlined_call_operand.vmem [shape: bf16[512,4], index: 4, kind: output, shape index: {}]  }
   0x1 LB: > { %s856_s16 = sadd.s32 4294967295, %s1050_s15   ;;  %p860_p0 = scmp.ge.s32.totalorder %s1050_s15, 1  ;;  %s1050_s15 = sphi %s1077_s15, %s14_s15  }
   0x2   : > { %p163_p1 = scmp.lt.s32.totalorder %s1050_s15, 3 }
   0x4   : > { %p164_p2 = pnand %p860_p0, %p163_p1 }
   0x5   : > { %v234_v0 = vld [vmem:[%s1279_s1] sm:$0x3] (!%p164_p2)  ;;  %vm364_vm0 = vcmask (!%p164_p2), 1041408   ;;  %s861_s19 = sshll.u32 (!%p164_p2), %s856_s16, 5  ;;  %vm315_vm1 = vcmask (!%p164_p2), 31744   ;;  %vm767_vm2 = vcmask (!%p164_p2), 27648  }
   0x6   : > { %167 = sbr.rel (%p164_p2) target bundleno = 269 (0x10d), region = 36  ;;  %1018 = vmatprep.subr.msk.bf16.mxu0 (!%p164_p2), %vm364_vm0, %v234_v0  ;;  %1019 = vmatprep.subr.msk.bf16.mxu1 (!%p164_p2), %vm364_vm0, %v234_v0  ;;  %v366_v1 = vsel (!%p164_p2), %vm364_vm0, %v234_v0, 0  ;;  %p190_p3 = scmp.lt.s32.totalorder (!%p164_p2), %s861_s19, 63  ;;  %v1133_v18 = vld [vmem:[%s1280_s2] ss:$0 sm:$0xff] (!%p164_p2) }
   0x7   : > { %983 = vmatpush3.bf16.msra.mxu0 (!%p164_p2), %v366_v1  ;;  %1017 = vmatpush3.bf16.msra.mxu1 (!%p164_p2), %v366_v1  ;;  %v1138_v20 = vld [vmem:[%s1281_s3] ss:$0 sm:$0xff] (!%p164_p2) }
   0xd   : > { %s1284_s19 = smov (!%p190_p3, %s861_s19), 63 }
   0xe   : > { %s862_s20 = sshll.u32 %s1284_s19, 2 }
   0xf   : > { %s1096_s23 = scalar_lea.vmem %s1278_s0, %s862_s20  ;;  %s1158_s30 = scalar_lea.vmem %s1282_s4, %s862_s20 }
  0x10   : > { %v1028_v2 = vld [vmem:[%s1096_s23] sm:$0xff]   ;;  %v1030_v4 = vld [vmem:[%s1096_s23 + $0x8] sm:$0xff]   ;;  %v1032_v6 = vld [vmem:[%s1096_s23 + $0x10] sm:$0xff]  }
  0x11   : > { %v1029_v3 = vld [vmem:[%s1096_s23 + $0x40] sm:$0xff]   ;;  %984 = vmatprep.mubr.msk.bf16.mxu0 %vm315_vm1, %v1028_v2  ;;  %v1031_v5 = vld [vmem:[%s1096_s23 + $0x48] sm:$0xff]   ;;  %v1033_v7 = vld [vmem:[%s1096_s23 + $0x50] sm:$0xff]  }
  0x12   : > { %1000 = vmatprep.mubr.msk.bf16.mxu1 %vm315_vm1, %v1029_v3  ;;  %985 = vmatmul.mubr.msk.bf16.vlgmr.msra.gmra.mrb[0].mxu0 %vm315_vm1, %v1030_v4  ;;  %v1034_v8 = vld [vmem:[%s1096_s23 + $0x18] sm:$0xff]   ;;  %v1036_v10 = vld [vmem:[%s1096_s23 + $0x20] sm:$0xff]   ;;  %v1038_v12 = vld [vmem:[%s1096_s23 + $0x28] sm:$0xff]  }
  0x13   : > { %1001 = vmatmul.mubr.msk.bf16.vlgmr.msra.gmra.mrb[0].mxu1 %vm315_vm1, %v1031_v5  ;;  %988 = vmatprep.mubr.msk.bf16.mxu0 %vm315_vm1, %v1032_v6  ;;  %v1035_v9 = vld [vmem:[%s1096_s23 + $0x58] sm:$0xff]   ;;  %v1037_v11 = vld [vmem:[%s1096_s23 + $0x60] sm:$0xff]   ;;  %v1039_v13 = vld [vmem:[%s1096_s23 + $0x68] sm:$0xff]  }
  0x14   : > { %1004 = vmatprep.mubr.msk.bf16.mxu1 %vm315_vm1, %v1033_v7  ;;  %v1040_v14 = vld [vmem:[%s1096_s23 + $0x30] sm:$0xff]   ;;  %v1042_v16 = vld [vmem:[%s1096_s23 + $0x38] sm:$0xff]  }
  0x15   : > { %v1041_v15 = vld [vmem:[%s1096_s23 + $0x70] sm:$0xff]   ;;  %v1043_v17 = vld [vmem:[%s1096_s23 + $0x78] sm:$0xff]  }
  0x1a   : > { %989 = vmatmul.mubr.msk.bf16.gmra.mrb[4].mxu0 %vm315_vm1, %v1034_v8 }
  0x1b   : > { %1005 = vmatmul.mubr.msk.bf16.gmra.mrb[4].mxu1 %vm315_vm1, %v1035_v9  ;;  %992 = vmatprep.mubr.msk.bf16.mxu0 %vm315_vm1, %v1036_v10 }
  0x1c   : > { %1008 = vmatprep.mubr.msk.bf16.mxu1 %vm315_vm1, %v1037_v11 }
  0x22   : > { %993 = vmatmul.mubr.msk.bf16.gmra.mrb[8].mxu0 %vm315_vm1, %v1038_v12 }
  0x23   : > { %1009 = vmatmul.mubr.msk.bf16.gmra.mrb[8].mxu1 %vm315_vm1, %v1039_v13  ;;  %996 = vmatprep.mubr.msk.bf16.mxu0 %vm315_vm1, %v1040_v14 }
  0x24   : > { %1012 = vmatprep.mubr.msk.bf16.mxu1 %vm315_vm1, %v1041_v15 }
  0x2a   : > { %997 = vmatmul.mubr.msk.bf16.gmra.mrb[12].mxu0 %vm315_vm1, %v1042_v16 }
  0x2b   : > { %1013 = vmatmul.mubr.msk.bf16.gmra.mrb[12].mxu1 %vm315_vm1, %v1043_v17 }
  0xe5   : > { %v986_v19 = vpop.f32.mrb[0].mxu0 }
  0xe6   : > { %v538_v21 = vmul.f32 %v986_v19, %v1133_v18  ;;  %v1002_v22 = vpop.f32.mrb[0].mxu1  ;;  %v402_v23 = vpop.f32.mrb[1].mxu0 }
  0xe7   : > { %v554_v24 = vmul.f32 %v1002_v22, %v1133_v18  ;;  %v536_v25 = vmul.f32 %v1133_v18, %v402_v23  ;;  %v466_v26 = vpop.f32.mrb[1].mxu1  ;;  %v987_v27 = vpop.f32.mrb[2].mxu0 }
  0xe8   : > { %v577_v28 = vadd.f32 %v1138_v20, %v538_v21  ;;  %v552_v29 = vmul.f32 %v1133_v18, %v466_v26  ;;  %v539_v30 = vmul.f32 %v987_v27, %v1133_v18  ;;  %v1003_v31 = vpop.f32.mrb[2].mxu1  ;;  %v405_v32 = vpop.f32.mrb[3].mxu0 }
  0xe9   : > { %v593_v33 = vadd.f32 %v1138_v20, %v554_v24  ;;  %v575_v34 = vadd.f32 %v1138_v20, %v536_v25  ;;  %v555_v35 = vmul.f32 %v1003_v31, %v1133_v18  ;;  %v537_v36 = vmul.f32 %v1133_v18, %v405_v32  ;;  %v469_v37 = vpop.f32.mrb[3].mxu1 }
  0xea   : > { %v609_v38 = vmax.f32 %v577_v28, 0.0  ;;  %v591_v39 = vadd.f32 %v1138_v20, %v552_v29  ;;  %v578_v40 = vadd.f32 %v1138_v20, %v539_v30  ;;  %v553_v41 = vmul.f32 %v1133_v18, %v469_v37 }
  0xeb   : > { %v625_v42 = vmax.f32 %v593_v33, 0.0  ;;  %v607_v43 = vmax.f32 %v575_v34, 0.0  ;;  %v594_v44 = vadd.f32 %v1138_v20, %v555_v35  ;;  %v576_v45 = vadd.f32 %v1138_v20, %v537_v36 }
  0xec   : > { %v935_v46 = vpack.c.bf16 %v609_v38, %v609_v38  ;;  %v623_v47 = vmax.f32 %v591_v39, 0.0  ;;  %v610_v48 = vmax.f32 %v578_v40, 0.0  ;;  %v592_v49 = vadd.f32 %v1138_v20, %v553_v41 }
  0xed   : > { %v951_v50 = vpack.c.bf16 %v625_v42, %v625_v42  ;;  %v933_v51 = vpack.c.bf16 %v607_v43, %v607_v43  ;;  %v626_v52 = vmax.f32 %v594_v44, 0.0  ;;  %v608_v53 = vmax.f32 %v576_v45, 0.0  ;;  %v990_v54 = vpop.f32.mrb[4].mxu0 }
  0xee   : > { %770 = vst.msk [vmem:[%s1158_s30 + $0x8] sm:$0xf] %vm767_vm2, %v935_v46  ;;  %v949_v55 = vpack.c.bf16 %v623_v47, %v623_v47  ;;  %v936_v56 = vpack.c.bf16 %v610_v48, %v610_v48  ;;  %v624_v57 = vmax.f32 %v592_v49, 0.0  ;;  %v542_v58 = vmul.f32 %v990_v54, %v1133_v18  ;;  %v1006_v59 = vpop.f32.mrb[4].mxu1  ;;  %v418_v60 = vpop.f32.mrb[5].mxu0 }
  0xef   : > { %786 = vst.msk [vmem:[%s1158_s30 + $0x48] sm:$0xf] %vm767_vm2, %v951_v50  ;;  %768 = vst.msk [vmem:[%s1158_s30] sm:$0xf] %vm767_vm2, %v933_v51  ;;  %v952_v61 = vpack.c.bf16 %v626_v52, %v626_v52  ;;  %v934_v62 = vpack.c.bf16 %v608_v53, %v608_v53  ;;  %v558_v63 = vmul.f32 %v1006_v59, %v1133_v18  ;;  %v482_v1 = vpop.f32.mrb[5].mxu1  ;;  %v991_v2 = vpop.f32.mrb[6].mxu0 }
  0xf0   : > { %v540_v0 = vmul.f32 %v1133_v18, %v418_v60  ;;  %784 = vst.msk [vmem:[%s1158_s30 + $0x40] sm:$0xf] %vm767_vm2, %v949_v55  ;;  %771 = vst.msk [vmem:[%s1158_s30 + $0xc] sm:$0xf] %vm767_vm2, %v936_v56  ;;  %v950_v3 = vpack.c.bf16 %v624_v57, %v624_v57  ;;  %v581_v4 = vadd.f32 %v1138_v20, %v542_v58  ;;  %v1007_v7 = vpop.f32.mrb[6].mxu1  ;;  %v421_v8 = vpop.f32.mrb[7].mxu0 }
  0xf1   : > { %v556_v5 = vmul.f32 %v1133_v18, %v482_v1  ;;  %v543_v6 = vmul.f32 %v991_v2, %v1133_v18  ;;  %787 = vst.msk [vmem:[%s1158_s30 + $0x4c] sm:$0xf] %vm767_vm2, %v952_v61  ;;  %769 = vst.msk [vmem:[%s1158_s30 + $0x4] sm:$0xf] %vm767_vm2, %v934_v62  ;;  %v597_v9 = vadd.f32 %v1138_v20, %v558_v63  ;;  %v485_v13 = vpop.f32.mrb[7].mxu1 }
  0xf2   : > { %v579_v10 = vadd.f32 %v1138_v20, %v540_v0  ;;  %v559_v11 = vmul.f32 %v1007_v7, %v1133_v18  ;;  %v541_v12 = vmul.f32 %v1133_v18, %v421_v8  ;;  %785 = vst.msk [vmem:[%s1158_s30 + $0x44] sm:$0xf] %vm767_vm2, %v950_v3  ;;  %v613_v14 = vmax.f32 %v581_v4, 0.0 }
  0xf3   : > { %v595_v15 = vadd.f32 %v1138_v20, %v556_v5  ;;  %v582_v16 = vadd.f32 %v1138_v20, %v543_v6  ;;  %v557_v17 = vmul.f32 %v1133_v18, %v485_v13  ;;  %v629_v19 = vmax.f32 %v597_v9, 0.0 }
  0xf4   : > { %v611_v21 = vmax.f32 %v579_v10, 0.0  ;;  %v598_v22 = vadd.f32 %v1138_v20, %v559_v11  ;;  %v580_v23 = vadd.f32 %v1138_v20, %v541_v12  ;;  %v939_v24 = vpack.c.bf16 %v613_v14, %v613_v14 }
  0xf5   : > { %v627_v25 = vmax.f32 %v595_v15, 0.0  ;;  %v614_v26 = vmax.f32 %v582_v16, 0.0  ;;  %v596_v27 = vadd.f32 %v1138_v20, %v557_v17  ;;  %v955_v28 = vpack.c.bf16 %v629_v19, %v629_v19  ;;  %v994_v32 = vpop.f32.mrb[8].mxu0 }
  0xf6   : > { %v937_v29 = vpack.c.bf16 %v611_v21, %v611_v21  ;;  %v630_v30 = vmax.f32 %v598_v22, 0.0  ;;  %v612_v31 = vmax.f32 %v580_v23, 0.0  ;;  %774 = vst.msk [vmem:[%s1158_s30 + $0x18] sm:$0xf] %vm767_vm2, %v939_v24  ;;  %v546_v36 = vmul.f32 %v994_v32, %v1133_v18  ;;  %v1010_v37 = vpop.f32.mrb[8].mxu1  ;;  %v434_v38 = vpop.f32.mrb[9].mxu0 }
  0xf7   : > { %v953_v33 = vpack.c.bf16 %v627_v25, %v627_v25  ;;  %v940_v34 = vpack.c.bf16 %v614_v26, %v614_v26  ;;  %v628_v35 = vmax.f32 %v596_v27, 0.0  ;;  %790 = vst.msk [vmem:[%s1158_s30 + $0x58] sm:$0xf] %vm767_vm2, %v955_v28  ;;  %v562_v41 = vmul.f32 %v1010_v37, %v1133_v18  ;;  %v498_v43 = vpop.f32.mrb[9].mxu1  ;;  %v995_v44 = vpop.f32.mrb[10].mxu0 }
  0xf8   : > { %772 = vst.msk [vmem:[%s1158_s30 + $0x10] sm:$0xf] %vm767_vm2, %v937_v29  ;;  %v956_v39 = vpack.c.bf16 %v630_v30, %v630_v30  ;;  %v938_v40 = vpack.c.bf16 %v612_v31, %v612_v31  ;;  %v544_v42 = vmul.f32 %v1133_v18, %v434_v38  ;;  %v585_v46 = vadd.f32 %v1138_v20, %v546_v36  ;;  %v1011_v49 = vpop.f32.mrb[10].mxu1  ;;  %v437_v50 = vpop.f32.mrb[11].mxu0 }
  0xf9   : > { %788 = vst.msk [vmem:[%s1158_s30 + $0x50] sm:$0xf] %vm767_vm2, %v953_v33  ;;  %775 = vst.msk [vmem:[%s1158_s30 + $0x1c] sm:$0xf] %vm767_vm2, %v940_v34  ;;  %v954_v45 = vpack.c.bf16 %v628_v35, %v628_v35  ;;  %v560_v47 = vmul.f32 %v1133_v18, %v498_v43  ;;  %v547_v48 = vmul.f32 %v995_v44, %v1133_v18  ;;  %v501_v55 = vpop.f32.mrb[11].mxu1 }
  0xfa   : > { %791 = vst.msk [vmem:[%s1158_s30 + $0x5c] sm:$0xf] %vm767_vm2, %v956_v39  ;;  %773 = vst.msk [vmem:[%s1158_s30 + $0x14] sm:$0xf] %vm767_vm2, %v938_v40  ;;  %v601_v51 = vadd.f32 %v1138_v20, %v562_v41  ;;  %v583_v52 = vadd.f32 %v1138_v20, %v544_v42  ;;  %v563_v53 = vmul.f32 %v1011_v49, %v1133_v18  ;;  %v617_v56 = vmax.f32 %v585_v46, 0.0 }
  0xfb   : > { %v545_v54 = vmul.f32 %v1133_v18, %v437_v50  ;;  %789 = vst.msk [vmem:[%s1158_s30 + $0x54] sm:$0xf] %vm767_vm2, %v954_v45  ;;  %v599_v57 = vadd.f32 %v1138_v20, %v560_v47  ;;  %v586_v58 = vadd.f32 %v1138_v20, %v547_v48  ;;  %v561_v59 = vmul.f32 %v1133_v18, %v501_v55 }
  0xfc   : > { %v633_v60 = vmax.f32 %v601_v51, 0.0  ;;  %v615_v61 = vmax.f32 %v583_v52, 0.0  ;;  %v602_v62 = vadd.f32 %v1138_v20, %v563_v53  ;;  %v943_v0 = vpack.c.bf16 %v617_v56, %v617_v56 }
  0xfd   : > { %v584_v63 = vadd.f32 %v1138_v20, %v545_v54  ;;  %v631_v1 = vmax.f32 %v599_v57, 0.0  ;;  %v618_v2 = vmax.f32 %v586_v58, 0.0  ;;  %v600_v3 = vadd.f32 %v1138_v20, %v561_v59  ;;  %v998_v8 = vpop.f32.mrb[12].mxu0 }
  0xfe   : > { %v959_v4 = vpack.c.bf16 %v633_v60, %v633_v60  ;;  %v941_v5 = vpack.c.bf16 %v615_v61, %v615_v61  ;;  %v634_v6 = vmax.f32 %v602_v62, 0.0  ;;  %778 = vst.msk [vmem:[%s1158_s30 + $0x28] sm:$0xf] %vm767_vm2, %v943_v0  ;;  %v550_v12 = vmul.f32 %v998_v8, %v1133_v18  ;;  %v1014_v13 = vpop.f32.mrb[12].mxu1  ;;  %v450_v14 = vpop.f32.mrb[13].mxu0 }
  0xff   : > { %v616_v7 = vmax.f32 %v584_v63, 0.0  ;;  %v957_v9 = vpack.c.bf16 %v631_v1, %v631_v1  ;;  %v944_v10 = vpack.c.bf16 %v618_v2, %v618_v2  ;;  %v632_v11 = vmax.f32 %v600_v3, 0.0  ;;  %v514_v21 = vpop.f32.mrb[13].mxu1  ;;  %v999_v22 = vpop.f32.mrb[14].mxu0 }
 0x100   : > { %794 = vst.msk [vmem:[%s1158_s30 + $0x68] sm:$0xf] %vm767_vm2, %v959_v4  ;;  %776 = vst.msk [vmem:[%s1158_s30 + $0x20] sm:$0xf] %vm767_vm2, %v941_v5  ;;  %v960_v15 = vpack.c.bf16 %v634_v6, %v634_v6  ;;  %v566_v17 = vmul.f32 %v1014_v13, %v1133_v18  ;;  %v548_v19 = vmul.f32 %v1133_v18, %v450_v14  ;;  %v1015_v27 = vpop.f32.mrb[14].mxu1  ;;  %v453_v28 = vpop.f32.mrb[15].mxu0 }
 0x101   : > { %v942_v16 = vpack.c.bf16 %v616_v7, %v616_v7  ;;  %792 = vst.msk [vmem:[%s1158_s30 + $0x60] sm:$0xf] %vm767_vm2, %v957_v9  ;;  %779 = vst.msk [vmem:[%s1158_s30 + $0x2c] sm:$0xf] %vm767_vm2, %v944_v10  ;;  %v958_v23 = vpack.c.bf16 %v632_v11, %v632_v11  ;;  %v589_v24 = vadd.f32 %v1138_v20, %v550_v12  ;;  %v517_v33 = vpop.f32.mrb[15].mxu1 }
 0x102   : > { %v564_v25 = vmul.f32 %v1133_v18, %v514_v21  ;;  %v551_v26 = vmul.f32 %v999_v22, %v1133_v18  ;;  %795 = vst.msk [vmem:[%s1158_s30 + $0x6c] sm:$0xf] %vm767_vm2, %v960_v15  ;;  %v605_v29 = vadd.f32 %v1138_v20, %v566_v17  ;;  %v587_v30 = vadd.f32 %v1138_v20, %v548_v19 }
 0x103   : > { %777 = vst.msk [vmem:[%s1158_s30 + $0x24] sm:$0xf] %vm767_vm2, %v942_v16  ;;  %v567_v31 = vmul.f32 %v1015_v27, %v1133_v18  ;;  %v549_v32 = vmul.f32 %v1133_v18, %v453_v28  ;;  %793 = vst.msk [vmem:[%s1158_s30 + $0x64] sm:$0xf] %vm767_vm2, %v958_v23  ;;  %v621_v34 = vmax.f32 %v589_v24, 0.0  ;;  %v565_v37 = vmul.f32 %v1133_v18, %v517_v33 }
 0x104   : > { %v603_v35 = vadd.f32 %v1138_v20, %v564_v25  ;;  %v590_v36 = vadd.f32 %v1138_v20, %v551_v26  ;;  %v637_v38 = vmax.f32 %v605_v29, 0.0  ;;  %v619_v39 = vmax.f32 %v587_v30, 0.0 }
 0x105   : > { %v606_v40 = vadd.f32 %v1138_v20, %v567_v31  ;;  %v588_v41 = vadd.f32 %v1138_v20, %v549_v32  ;;  %v947_v42 = vpack.c.bf16 %v621_v34, %v621_v34  ;;  %v604_v45 = vadd.f32 %v1138_v20, %v565_v37 }
 0x106   : > { %v635_v43 = vmax.f32 %v603_v35, 0.0  ;;  %v622_v44 = vmax.f32 %v590_v36, 0.0  ;;  %v963_v46 = vpack.c.bf16 %v637_v38, %v637_v38  ;;  %v945_v47 = vpack.c.bf16 %v619_v39, %v619_v39 }
 0x107   : > { %v638_v18 = vmax.f32 %v606_v40, 0.0  ;;  %v620_v48 = vmax.f32 %v588_v41, 0.0  ;;  %782 = vst.msk [vmem:[%s1158_s30 + $0x38] sm:$0xf] %vm767_vm2, %v947_v42  ;;  %v636_v51 = vmax.f32 %v604_v45, 0.0 }
 0x108   : > { %v961_v49 = vpack.c.bf16 %v635_v43, %v635_v43  ;;  %v948_v50 = vpack.c.bf16 %v622_v44, %v622_v44  ;;  %798 = vst.msk [vmem:[%s1158_s30 + $0x78] sm:$0xf] %vm767_vm2, %v963_v46  ;;  %780 = vst.msk [vmem:[%s1158_s30 + $0x30] sm:$0xf] %vm767_vm2, %v945_v47 }
 0x109   : > { %v964_v52 = vpack.c.bf16 %v638_v18, %v638_v18  ;;  %v946_v53 = vpack.c.bf16 %v620_v48, %v620_v48  ;;  %v962_v20 = vpack.c.bf16 %v636_v51, %v636_v51 }
 0x10a   : > { %796 = vst.msk [vmem:[%s1158_s30 + $0x70] sm:$0xf] %vm767_vm2, %v961_v49  ;;  %783 = vst.msk [vmem:[%s1158_s30 + $0x3c] sm:$0xf] %vm767_vm2, %v948_v50 }
 0x10b   : > { %799 = vst.msk [vmem:[%s1158_s30 + $0x7c] sm:$0xf] %vm767_vm2, %v964_v52  ;;  %781 = vst.msk [vmem:[%s1158_s30 + $0x34] sm:$0xf] %vm767_vm2, %v946_v53 }
 0x10c   : > { %797 = vst.msk [vmem:[%s1158_s30 + $0x74] sm:$0xf] %vm767_vm2, %v962_v20 }
 0x10d PF: > { %s14_s15 = sadd.s32 1, %s1050_s15  }
 0x10e   : > { %p11_p4 = scmp.ge.s32.totalorder %s14_s15, 4  }
 0x110   :  { %13 = sbr.rel (!%p11_p4) target bundleno = 1 (0x1), region = 66 }

// kernel: bottleneck_forward.4
= control target key start
LH: loop header
LB: loop body
LE: loop exit
PB: predicated region body
PF: predicated region fallthrough
CT: control target
= control target key end

     0   :  { %s1043_s15 = smov 0   ;;  %s1215_s0 = inlined_call_operand.vmem [shape: bf16[2,9,9,16], index: 0, kind: input, shape index: {}]   ;;  %s1216_s1 = inlined_call_operand.vmem [shape: bf16[64,4], index: 1, kind: input, shape index: {}]   ;;  %s1217_s2 = inlined_call_operand.vmem [shape: f32[1,4], index: 2, kind: input, shape index: {}]   ;;  %s1218_s3 = inlined_call_operand.vmem [shape: f32[1,4], index: 3, kind: input, shape index: {}]   ;;  %s1219_s4 = inlined_call_operand.vmem [shape: bf16[2,8,8,4], index: 4, kind: output, shape index: {}]  }
   0x1 LB: > { %s856_s16 = sadd.s32 4294967295, %s1016_s15   ;;  %p860_p0 = scmp.ge.s32.totalorder %s1016_s15, 1  ;;  %s1016_s15 = sphi %s1043_s15, %s14_s15  }
   0x2   : > { %p162_p1 = scmp.lt.s32.totalorder %s1016_s15, 3 }
   0x4   : > { %p163_p2 = pnand %p860_p0, %p162_p1 }
   0x5   : > { %v998_v0 = vld [vmem:[%s1216_s1 + $0x10] sm:$0xff] (!%p163_p2)   ;;  %p188_p3 = scmp.lt.s32.totalorder (!%p163_p2), %s856_s16, 1  ;;  %v1002_v1 = vld [vmem:[%s1216_s1 + $0x8] sm:$0xff] (!%p163_p2)   ;;  %v1062_v2 = vld [vmem:[%s1216_s1] sm:$0xff] (!%p163_p2)   ;;  %vm354_vm0 = vcmask (!%p163_p2), 130048   ;;  %vm792_vm4 = vcmask (!%p163_p2), 27648  }
   0x6   : > { %166 = sbr.rel (%p163_p2) target bundleno = 287 (0x11f), region = 36  ;;  %945 = vmatprep.subr.bf16.mxu0 (!%p163_p2), %v998_v0  ;;  %925 = vmatprep.subr.bf16.mxu1 (!%p163_p2), %v1002_v1  ;;  %v1006_v3 = vld [vmem:[%s1216_s1 + $0x18] sm:$0xff] (!%p163_p2)   ;;  %vm219_vm1 = vsmask.f32 (!%p163_p2), 3328  ;;  %vm220_vm2 = vsmask.f32 (!%p163_p2), 7440 }
   0x7   : > { %946 = vmatpush3.bf16.msra.mxu0 (!%p163_p2), %v998_v0  ;;  %926 = vmatpush3.bf16.msra.mxu1 (!%p163_p2), %v1002_v1  ;;  %vm1123_vm3 = vmor (!%p163_p2), %vm219_vm1, %vm220_vm2 }
   0x8   : > { %935 = vmatprep.subr.bf16.mxu1 (!%p163_p2), %v1062_v2  ;;  %955 = vmatprep.subr.bf16.mxu0 (!%p163_p2), %v1006_v3 }
   0xd   : > { %s1223_s16 = smov (!%p188_p3, %s856_s16), 1 }
   0xe   : > { %s989_s23 = smul.u32 72, %s1223_s16  ;;  %s904_s7 = sshll.u32 %s1223_s16, 5 }
   0xf   : > { %s1194_s10 = scalar_lea.vmem %s1219_s4, %s904_s7 }
  0x10   : > { %s1072_s28 = scalar_lea.vmem %s1215_s0, %s989_s23 }
  0x11   : > { %v1075_v4 = vld [vmem:[%s1072_s28 + $0x8] sm:$0xf]  ;;  %v1078_v5 = vld [vmem:[%s1072_s28 + $0x10] sm:$0xf]  ;;  %v1081_v6 = vld [vmem:[%s1072_s28 + $0x18] sm:$0xf] }
  0x12   : > { %v251_v7 = vshrl.u32 %v1078_v5, 16  ;;  %v254_v8 = vshll.u32 %v1078_v5, 16  ;;  %v1086_v9 = vld [vmem:[%s1072_s28 + $0x20] sm:$0xf]  ;;  %v237_v10 = vshrl.u32 %v1075_v4, 16  ;;  %v240_v11 = vshll.u32 %v1075_v4, 16 }
  0x13   : > { %v882_v12 = vcombine.low %v1075_v4, %v1078_v5  ;;  %v1093_v13 = vld [vmem:[%s1072_s28 + $0x28] sm:$0xf]  ;;  %v1096_v14 = vld [vmem:[%s1072_s28 + $0x30] sm:$0xf]  ;;  %v279_v17 = vshrl.u32 %v1086_v9, 16  ;;  %v883_v18 = vcombine.low %v1081_v6, %v1086_v9  ;;  %v282_v20 = vshll.u32 %v1086_v9, 16 }
  0x14   : > { %v253_v15 = vrot.slane %v251_v7, 4  ;;  %v256_v16 = vrot.slane %v254_v8, 5  ;;  %v1102_v19 = vld [vmem:[%s1072_s28] sm:$0xf]  ;;  %v293_v21 = vshrl.u32 %v1093_v13, 16  ;;  %v296_v22 = vshll.u32 %v1093_v13, 16 }
  0x15   : > { %947 = vmatprep.mubr.msk.bf16.mxu0 %vm354_vm0, %v882_v12  ;;  %v884_v23 = vcombine.low %v1093_v13, %v1096_v14  ;;  %v200_v24 = vld [vmem:[%s1072_s28 + $0x4] sm:$0x1]  ;;  %v307_v25 = vshrl.u32 %v1096_v14, 16  ;;  %v310_v26 = vshll.u32 %v1096_v14, 16  ;;  %v202_v27 = vld [vmem:[%s1072_s28 + $0xc] sm:$0x1]  ;;  %v875_v40 = vcombine.low %v1086_v9, %v1093_v13 }
  0x16   : > { %948 = vmatmul.mubr.msk.bf16.vlgmr.msra.gmra.mrb[0].mxu0 %vm354_vm0, %v883_v18  ;;  %v204_v28 = vld [vmem:[%s1072_s28 + $0x14] sm:$0x1]  ;;  %v257_v29 = vor.u32 %v256_v16, %v253_v15  ;;  %v223_v30 = vshrl.u32 %v1102_v19, 16  ;;  %v226_v31 = vshll.u32 %v1102_v19, 16  ;;  %v232_v32 = vshll.u32 %v200_v24, 16 }
  0x17   : > { %951 = vmatprep.mubr.msk.bf16.mxu0 %vm354_vm0, %v884_v23  ;;  %v239_v33 = vrot.slane %v237_v10, 4  ;;  %956 = vmatpush3.bf16.msra.mxu0 %v1006_v3  ;;  %v206_v34 = vld [vmem:[%s1072_s28 + $0x1c] sm:$0x1]  ;;  %v242_v35 = vrot.slane %v240_v11, 5  ;;  %v246_v36 = vshll.u32 %v202_v27, 16  ;;  %v260_v38 = vshll.u32 %v204_v28, 16 }
  0x18   : > { %v258_v37 = vrot.slane %v257_v29, 4  ;;  %v208_v39 = vld [vmem:[%s1072_s28 + $0x24] sm:$0x1]  ;;  %v225_v41 = vrot.slane %v223_v30, 4  ;;  %v228_v42 = vrot.slane %v226_v31, 5  ;;  %v234_v43 = vrot.slane %v232_v32, 5 }
  0x19   : > { %v265_v44 = vshrl.u32 %v1081_v6, 16  ;;  %v243_v45 = vor.u32 %v242_v35, %v239_v33  ;;  %v248_v46 = vrot.slane %v246_v36, 5  ;;  %v262_v47 = vrot.slane %v260_v38, 5  ;;  %v1130_v49 = vld [vmem:[%s1072_s28 + $0x38] sm:$0xf] }
  0x1a   : > { %v268_v48 = vshll.u32 %v1081_v6, 16  ;;  %v229_v50 = vor.u32 %v228_v42, %v225_v41  ;;  %v274_v52 = vshll.u32 %v206_v34, 16  ;;  %v281_v53 = vrot.slane %v279_v17, 4  ;;  %v215_v58 = vld [vmem:[%s1072_s28 + $0x40] sm:$0xf] }
  0x1b   : > { %v267_v51 = vrot.slane %v265_v44, 4  ;;  %v244_v54 = vrot.slane %v243_v45, 4  ;;  %v263_v55 = vsel %vm1123_vm3, %v258_v37, %v262_v47  ;;  %v284_v57 = vrot.slane %v282_v20, 5  ;;  %v210_v7 = vld [vmem:[%s1072_s28 + $0x2c] sm:$0x1] }
  0x1c   : > { %v270_v56 = vrot.slane %v268_v48, 5  ;;  %v230_v59 = vrot.slane %v229_v50, 4  ;;  %v276_v60 = vrot.slane %v274_v52, 5  ;;  %v288_v61 = vshll.u32 %v208_v39, 16  ;;  %v212_v28 = vld [vmem:[%s1072_s28 + $0x34] sm:$0x1] }
  0x1d   : > { %v321_v62 = vshrl.u32 %v1130_v49, 16  ;;  %v249_v63 = vsel %vm1123_vm3, %v244_v54, %v248_v46  ;;  %v285_v1 = vor.u32 %v284_v57, %v281_v53  ;;  %v324_v3 = vshll.u32 %v1130_v49, 16  ;;  %v214_v32 = vld [vmem:[%s1072_s28 + $0x3c] sm:$0x1]  ;;  %v216_v36 = vld [vmem:[%s1072_s28 + $0x44] sm:$0x1] }
  0x1e   : > { %v271_v0 = vor.u32 %v270_v56, %v267_v51  ;;  %v235_v8 = vsel %vm1123_vm3, %v230_v59, %v234_v43  ;;  %v290_v10 = vrot.slane %v288_v61, 5  ;;  %v891_v11 = vcombine.low %v249_v63, %v263_v55  ;;  %v900_v9 = vld [vmem:[%s1217_s2] ss:$0 sm:$0xff] }
  0x1f   : > { %v885_v12 = vcombine.low %v1130_v49, %v215_v58  ;;  %v286_v16 = vrot.slane %v285_v1, 4  ;;  %v864_v17 = vcombine.low %v235_v8, %v249_v63  ;;  %v635_v18 = vshrl.u32 %v215_v58, 16 }
  0x20   : > { %v272_v15 = vrot.slane %v271_v0, 4  ;;  %v638_v20 = vshll.u32 %v215_v58, 16  ;;  %v295_v23 = vrot.slane %v293_v21, 4  ;;  %v298_v24 = vrot.slane %v296_v22, 5 }
  0x21   : > { %952 = vmatmul.mubr.msk.bf16.gmra.mrb[4].mxu0 %vm354_vm0, %v885_v12  ;;  %v302_v27 = vshll.u32 %v210_v7, 16  ;;  %v291_v30 = vsel %vm1123_vm3, %v286_v16, %v290_v10  ;;  %927 = vmatprep.mubr.msk.bf16.mxu1 %vm354_vm0, %v864_v17  ;;  %v637_v31 = vrot.slane %v635_v18, 4  ;;  %v309_v33 = vrot.slane %v307_v25, 4 }
  0x22   : > { %v277_v29 = vsel %vm1123_vm3, %v272_v15, %v276_v60  ;;  %957 = vmatprep.mubr.msk.bf16.mxu0 %vm354_vm0, %v891_v11  ;;  %v640_v22 = vrot.slane %v638_v20, 5  ;;  %v299_v35 = vor.u32 %v298_v24, %v295_v23  ;;  %v312_v38 = vrot.slane %v310_v26, 5 }
  0x23   : > { %v865_v34 = vcombine.low %v263_v55, %v277_v29  ;;  %v892_v21 = vcombine.low %v277_v29, %v291_v30  ;;  %v304_v37 = vrot.slane %v302_v27, 5  ;;  %v316_v39 = vshll.u32 %v212_v28, 16 }
  0x24   : > { %v323_v41 = vrot.slane %v321_v62, 4  ;;  %v300_v42 = vrot.slane %v299_v35, 4  ;;  %v326_v43 = vrot.slane %v324_v3, 5  ;;  %v330_v44 = vshll.u32 %v214_v32, 16 }
  0x25   : > { %928 = vmatmul.mubr.msk.bf16.vlgmr.msra.gmra.mrb[0].mxu1 %vm354_vm0, %v865_v34  ;;  %v641_v45 = vor.u32 %v640_v22, %v637_v31  ;;  %v313_v25 = vor.u32 %v312_v38, %v309_v33  ;;  %v318_v46 = vrot.slane %v316_v39, 5  ;;  %v644_v47 = vshll.u32 %v216_v36, 16 }
  0x26   : > { %936 = vmatpush3.bf16.msra.mxu1 %v1062_v2  ;;  %v305_v48 = vsel %vm1123_vm3, %v300_v42, %v304_v37  ;;  %v327_v50 = vor.u32 %v326_v43, %v323_v41  ;;  %v332_v51 = vrot.slane %v330_v44, 5  ;;  %v873_v59 = vcombine.low %v1102_v19, %v1075_v4 }
  0x27   : > { %v642_v52 = vrot.slane %v641_v45, 4  ;;  %v866_v26 = vcombine.low %v291_v30, %v305_v48  ;;  %v314_v53 = vrot.slane %v313_v25, 4  ;;  %v646_v54 = vrot.slane %v644_v47, 5 }
  0x28   : > { %v328_v55 = vrot.slane %v327_v50, 4  ;;  %v874_v62 = vcombine.low %v1078_v5, %v1081_v6  ;;  %v876_v4 = vcombine.low %v1096_v14, %v1130_v49  ;;  %v901_v14 = vld [vmem:[%s1218_s3] ss:$0 sm:$0xff] }
  0x29   : > { %958 = vmatmul.mubr.msk.bf16.vlgmr.msra.gmra.mrb[0].mxu0 %vm354_vm0, %v892_v21  ;;  %931 = vmatprep.mubr.msk.bf16.mxu1 %vm354_vm0, %v866_v26  ;;  %v319_v2 = vsel %vm1123_vm3, %v314_v53, %v318_v46  ;;  %v647_v56 = vsel %vm1123_vm3, %v642_v52, %v646_v54 }
  0x2a   : > { %v333_v57 = vsel %vm1123_vm3, %v328_v55, %v332_v51  ;;  %v893_v58 = vcombine.low %v305_v48, %v319_v2 }
  0x2b   : > { %v867_v60 = vcombine.low %v319_v2, %v333_v57  ;;  %v894_v61 = vcombine.low %v333_v57, %v647_v56 }
  0x2c   : > { %961 = vmatprep.mubr.msk.bf16.mxu0 %vm354_vm0, %v893_v58 }
  0x2d   : > { %932 = vmatmul.mubr.msk.bf16.gmra.mrb[4].mxu1 %vm354_vm0, %v867_v60 }
  0x2e   : > { %937 = vmatprep.mubr.msk.bf16.mxu1 %vm354_vm0, %v873_v59 }
  0x31   : > { %962 = vmatmul.mubr.msk.bf16.gmra.mrb[4].mxu0 %vm354_vm0, %v894_v61 }
  0x35   : > { %938 = vmatmul.mubr.msk.bf16.vlgmr.msra.gmra.mrb[0].mxu1 %vm354_vm0, %v874_v62 }
  0x36   : > { %941 = vmatprep.mubr.msk.bf16.mxu1 %vm354_vm0, %v875_v40 }
  0x3d   : > { %942 = vmatmul.mubr.msk.bf16.gmra.mrb[4].mxu1 %vm354_vm0, %v876_v4 }
  0xfc   : > { %v959_v19 = vpop.f32.mrb[0].mxu0 }
  0xfd   : > { %v707_v63 = vpop.f32.mrb[1].mxu0 }
  0xfe   : > { %v960_v0 = vpop.f32.mrb[2].mxu0 }
  0xff   : > { %v710_v1 = vpop.f32.mrb[3].mxu0 }
 0x104   : > { %v963_v3 = vpop.f32.mrb[4].mxu0 }
 0x105   : > { %v723_v7 = vpop.f32.mrb[5].mxu0 }
 0x106   : > { %v964_v5 = vpop.f32.mrb[6].mxu0 }
 0x107   : > { %v726_v6 = vpop.f32.mrb[7].mxu0 }
 0x108   : > { %v939_v8 = vpop.f32.mrb[0].mxu1 }
 0x109   : > { %v965_v13 = vadd.f32 %v959_v19, %v939_v8  ;;  %v504_v10 = vpop.f32.mrb[1].mxu1 }
 0x10a   : > { %v966_v49 = vadd.f32 %v707_v63, %v504_v10  ;;  %v940_v11 = vpop.f32.mrb[2].mxu1 }
 0x10b   : > { %v755_v12 = vmul.f32 %v965_v13, %v900_v9  ;;  %v967_v15 = vadd.f32 %v960_v0, %v940_v11  ;;  %v507_v16 = vpop.f32.mrb[3].mxu1 }
 0x10c   : > { %v753_v17 = vmul.f32 %v966_v49, %v900_v9  ;;  %v968_v18 = vadd.f32 %v710_v1, %v507_v16 }
 0x10d   : > { %v770_v20 = vadd.f32 %v901_v14, %v755_v12  ;;  %v756_v23 = vmul.f32 %v967_v15, %v900_v9 }
 0x10e   : > { %v768_v24 = vadd.f32 %v901_v14, %v753_v17  ;;  %v754_v27 = vmul.f32 %v968_v18, %v900_v9 }
 0x10f   : > { %v778_v28 = vmax.f32 %v770_v20, 0.0  ;;  %v771_v29 = vadd.f32 %v901_v14, %v756_v23 }
 0x110   : > { %v776_v30 = vmax.f32 %v768_v24, 0.0  ;;  %v769_v31 = vadd.f32 %v901_v14, %v754_v27  ;;  %v943_v32 = vpop.f32.mrb[4].mxu1 }
 0x111   : > { %v786_v33 = vpack.c.bf16 %v778_v28, %v778_v28  ;;  %v779_v34 = vmax.f32 %v771_v29, 0.0  ;;  %v969_v21 = vadd.f32 %v963_v3, %v943_v32  ;;  %v520_v22 = vpop.f32.mrb[5].mxu1 }
 0x112   : > { %v784_v35 = vpack.c.bf16 %v776_v30, %v776_v30  ;;  %v777_v36 = vmax.f32 %v769_v31, 0.0  ;;  %v970_v37 = vadd.f32 %v723_v7, %v520_v22  ;;  %v944_v38 = vpop.f32.mrb[6].mxu1 }
 0x113   : > { %795 = vst.msk [vmem:[%s1194_s10 + $0x8] sm:$0xf] %vm792_vm4, %v786_v33  ;;  %v787_v39 = vpack.c.bf16 %v779_v34, %v779_v34  ;;  %v759_v41 = vmul.f32 %v969_v21, %v900_v9  ;;  %v971_v42 = vadd.f32 %v964_v5, %v944_v38  ;;  %v523_v43 = vpop.f32.mrb[7].mxu1 }
 0x114   : > { %793 = vst.msk [vmem:[%s1194_s10] sm:$0xf] %vm792_vm4, %v784_v35  ;;  %v785_v44 = vpack.c.bf16 %v777_v36, %v777_v36  ;;  %v757_v45 = vmul.f32 %v970_v37, %v900_v9  ;;  %v972_v25 = vadd.f32 %v726_v6, %v523_v43 }
 0x115   : > { %796 = vst.msk [vmem:[%s1194_s10 + $0xc] sm:$0xf] %vm792_vm4, %v787_v39  ;;  %v774_v46 = vadd.f32 %v901_v14, %v759_v41  ;;  %v760_v47 = vmul.f32 %v971_v42, %v900_v9 }
 0x116   : > { %794 = vst.msk [vmem:[%s1194_s10 + $0x4] sm:$0xf] %vm792_vm4, %v785_v44  ;;  %v772_v48 = vadd.f32 %v901_v14, %v757_v45  ;;  %v758_v50 = vmul.f32 %v972_v25, %v900_v9 }
 0x117   : > { %v782_v51 = vmax.f32 %v774_v46, 0.0  ;;  %v775_v52 = vadd.f32 %v901_v14, %v760_v47 }
 0x118   : > { %v780_v26 = vmax.f32 %v772_v48, 0.0  ;;  %v773_v53 = vadd.f32 %v901_v14, %v758_v50 }
 0x119   : > { %v790_v54 = vpack.c.bf16 %v782_v51, %v782_v51  ;;  %v783_v55 = vmax.f32 %v775_v52, 0.0 }
 0x11a   : > { %v788_v2 = vpack.c.bf16 %v780_v26, %v780_v26  ;;  %v781_v56 = vmax.f32 %v773_v53, 0.0 }
 0x11b   : > { %799 = vst.msk [vmem:[%s1194_s10 + $0x18] sm:$0xf] %vm792_vm4, %v790_v54  ;;  %v791_v57 = vpack.c.bf16 %v783_v55, %v783_v55 }
 0x11c   : > { %797 = vst.msk [vmem:[%s1194_s10 + $0x10] sm:$0xf] %vm792_vm4, %v788_v2  ;;  %v789_v58 = vpack.c.bf16 %v781_v56, %v781_v56 }
 0x11d   : > { %800 = vst.msk [vmem:[%s1194_s10 + $0x1c] sm:$0xf] %vm792_vm4, %v791_v57 }
 0x11e   : > { %798 = vst.msk [vmem:[%s1194_s10 + $0x14] sm:$0xf] %vm792_vm4, %v789_v58 }
 0x11f PF: > { %s14_s15 = sadd.s32 1, %s1016_s15  }
 0x120   : > { %p11_p4 = scmp.ge.s32.totalorder %s14_s15, 4  }
 0x122   :  { %13 = sbr.rel (!%p11_p4) target bundleno = 1 (0x1), region = 66 }

// kernel: bottleneck_forward.5
= control target key start
LH: loop header
LB: loop body
LE: loop exit
PB: predicated region body
PF: predicated region fallthrough
CT: control target
= control target key end

     0   :  { %vm113_vm0 = vcmask 1041408   ;;  %vm88_vm1 = vcmask 31744   ;;  %s917_s0 = inlined_call_operand.vmem [shape: bf16[128,4], index: 0, kind: input, shape index: {}]   ;;  %s918_s1 = inlined_call_operand.vmem [shape: bf16[128,4], index: 1, kind: input, shape index: {}]   ;;  %s919_s2 = inlined_call_operand.vmem [shape: bf16[4,16], index: 2, kind: input, shape index: {}]   ;;  %s920_s3 = inlined_call_operand.vmem [shape: f32[1,16], index: 3, kind: input, shape index: {}]   ;;  %s921_s4 = inlined_call_operand.vmem [shape: f32[1,16], index: 4, kind: input, shape index: {}]   ;;  %s922_s5 = inlined_call_operand.vmem [shape: bf16[4,16], index: 5, kind: input, shape index: {}]   ;;  %s923_s6 = inlined_call_operand.vmem [shape: f32[1,16], index: 6, kind: input, shape index: {}]   ;;  %s924_s7 = inlined_call_operand.vmem [shape: f32[1,16], index: 7, kind: input, shape index: {}]   ;;  %s925_s8 = inlined_call_operand.hbm [shape: f32[128,16], index: 8, kind: output, shape index: {}]  }
   0x1   :  { %v47_v0 = vld [vmem:[%s919_s2] sm:$0x3]  ;;  %v649_v6 = vld [vmem:[%s917_s0 + $0x8] sm:$0xff]   ;;  %v651_v8 = vld [vmem:[%s917_s0 + $0x10] sm:$0xff]  }
   0x2   :  { %v276_v1 = vld [vmem:[%s922_s5] sm:$0x3]  ;;  %642 = vmatprep.subr.msk.bf16.mxu0 %vm113_vm0, %v47_v0  ;;  %v115_v3 = vsel %vm113_vm0, %v47_v0, 0  ;;  %v650_v7 = vld [vmem:[%s918_s1 + $0x8] sm:$0xff]   ;;  %v652_v9 = vld [vmem:[%s918_s1 + $0x10] sm:$0xff]  }
   0x3   :  { %v647_v2 = vld [vmem:[%s917_s0] sm:$0xff]   ;;  %643 = vmatprep.subr.msk.bf16.mxu1 %vm113_vm0, %v276_v1  ;;  %v342_v4 = vsel %vm113_vm0, %v276_v1, 0  ;;  %607 = vmatpush3.bf16.msra.mxu0 %v115_v3  ;;  %v653_v10 = vld [vmem:[%s917_s0 + $0x18] sm:$0xff]   ;;  %v657_v14 = vld [vmem:[%s917_s0 + $0x28] sm:$0xff]  }
   0x4   :  { %625 = vmatpush3.bf16.msra.mxu1 %v342_v4  ;;  %v648_v5 = vld [vmem:[%s918_s1] sm:$0xff]   ;;  %608 = vmatprep.mubr.msk.bf16.mxu0 %vm88_vm1, %v647_v2  ;;  %v654_v11 = vld [vmem:[%s918_s1 + $0x18] sm:$0xff]  }
   0x5   :  { %626 = vmatprep.mubr.msk.bf16.mxu1 %vm88_vm1, %v648_v5  ;;  %v655_v12 = vld [vmem:[%s917_s0 + $0x20] sm:$0xff]  }
   0x6   :  { %609 = vmatmul.mubr.msk.bf16.vlgmr.msra.gmra.mrb[0].mxu0 %vm88_vm1, %v649_v6  ;;  %v656_v13 = vld [vmem:[%s918_s1 + $0x20] sm:$0xff]  }
   0x7   :  { %627 = vmatmul.mubr.msk.bf16.vlgmr.msra.gmra.mrb[0].mxu1 %vm88_vm1, %v650_v7  ;;  %612 = vmatprep.mubr.msk.bf16.mxu0 %vm88_vm1, %v651_v8 }
   0x8   :  { %630 = vmatprep.mubr.msk.bf16.mxu1 %vm88_vm1, %v652_v9 }
   0xe   :  { %613 = vmatmul.mubr.msk.bf16.gmra.mrb[4].mxu0 %vm88_vm1, %v653_v10 }
   0xf   :  { %631 = vmatmul.mubr.msk.bf16.gmra.mrb[4].mxu1 %vm88_vm1, %v654_v11  ;;  %616 = vmatprep.mubr.msk.bf16.mxu0 %vm88_vm1, %v655_v12 }
  0x10   :  { %634 = vmatprep.mubr.msk.bf16.mxu1 %vm88_vm1, %v656_v13 }
  0x11   :  { %13 = vsyncpa [#allocation3], 0  ;;  %v658_v15 = vld [vmem:[%s918_s1 + $0x28] sm:$0xff]   ;;  %v659_v16 = vld [vmem:[%s917_s0 + $0x30] sm:$0xff]   ;;  %vm519_vm2 = vcmask 130048  }
  0x12   :  { %v660_v17 = vld [vmem:[%s918_s1 + $0x30] sm:$0xff]   ;;  %v661_v18 = vld [vmem:[%s917_s0 + $0x38] sm:$0xff]   ;;  %v808_v20 = vld [vmem:[%s920_s3] ss:$0 sm:$0xff]  ;;  %s687_s3 = smov [#allocation2]  }
  0x13   :  { %v662_v19 = vld [vmem:[%s918_s1 + $0x38] sm:$0xff]   ;;  %v813_v21 = vld [vmem:[%s923_s6] ss:$0 sm:$0xff] }
  0x14   :  { %v818_v23 = vld [vmem:[%s921_s4] ss:$0 sm:$0xff]  ;;  %s541_s4 = sshll.u32 %s687_s3, 4  ;;  %s542_s4 = int_to_ptr.vmem [resolvable:$true] %s541_s4 }
  0x15   :  { %v824_v26 = vld [vmem:[%s924_s7] ss:$0 sm:$0xff]  ;;  %s663_s6 = scalar_lea.vmem %s542_s4, 2048  ;;  %p668_p1 = scmp.lt.s32.totalorder %s542_s4, %s542_s4 }
  0x16   :  { %617 = vmatmul.mubr.msk.bf16.gmra.mrb[8].mxu0 %vm88_vm1, %v657_v14  ;;  %p664_p0 = scmp.ne.s32.totalorder %s542_s4, %s663_s6  ;;  %p669_p2 = scmp.lt.s32.totalorder %s663_s6, %s663_s6 }
  0x17   :  { %635 = vmatmul.mubr.msk.bf16.gmra.mrb[8].mxu1 %vm88_vm1, %v658_v15  ;;  %620 = vmatprep.mubr.msk.bf16.mxu0 %vm88_vm1, %v659_v16 }
  0x18   :  { %638 = vmatprep.mubr.msk.bf16.mxu1 %vm88_vm1, %v660_v17  ;;  %p670_p3 = por %p669_p2, %p668_p1 }
  0x1a   :  { %p671_p4 = pnand %p670_p3, %p664_p0 }
  0x1e   :  { %621 = vmatmul.mubr.msk.bf16.gmra.mrb[12].mxu0 %vm88_vm1, %v661_v18 }
  0x1f   :  { %639 = vmatmul.mubr.msk.bf16.gmra.mrb[12].mxu1 %vm88_vm1, %v662_v19 }
  0xd9   :  { %v610_v22 = vpop.f32.mrb[0].mxu0 }
  0xda   :  { %v223_v24 = vmul.f32 %v610_v22, %v808_v20  ;;  %v628_v25 = vpop.f32.mrb[0].mxu1  ;;  %v151_v27 = vpop.f32.mrb[1].mxu0 }
  0xdb   :  { %v450_v28 = vmul.f32 %v628_v25, %v813_v21  ;;  %v221_v29 = vmul.f32 %v808_v20, %v151_v27  ;;  %v378_v30 = vpop.f32.mrb[1].mxu1  ;;  %v611_v31 = vpop.f32.mrb[2].mxu0 }
  0xdc   :  { %v246_v32 = vadd.f32 %v818_v23, %v223_v24  ;;  %v448_v33 = vmul.f32 %v813_v21, %v378_v30  ;;  %v224_v34 = vmul.f32 %v611_v31, %v808_v20  ;;  %v629_v35 = vpop.f32.mrb[2].mxu1  ;;  %v154_v36 = vpop.f32.mrb[3].mxu0 }
  0xdd   :  { %v473_v37 = vadd.f32 %v824_v26, %v450_v28  ;;  %v244_v38 = vadd.f32 %v818_v23, %v221_v29  ;;  %v451_v39 = vmul.f32 %v629_v35, %v813_v21  ;;  %v222_v40 = vmul.f32 %v808_v20, %v154_v36  ;;  %v381_v41 = vpop.f32.mrb[3].mxu1 }
  0xde   :  { %v471_v42 = vadd.f32 %v824_v26, %v448_v33  ;;  %v247_v43 = vadd.f32 %v818_v23, %v224_v34  ;;  %v449_v44 = vmul.f32 %v813_v21, %v381_v41 }
  0xdf   :  { %v489_v45 = vadd.f32 %v473_v37, %v246_v32  ;;  %v474_v46 = vadd.f32 %v824_v26, %v451_v39  ;;  %v245_v47 = vadd.f32 %v818_v23, %v222_v40 }
  0xe0   :  { %v487_v48 = vadd.f32 %v471_v42, %v244_v38  ;;  %v472_v49 = vadd.f32 %v824_v26, %v449_v44 }
  0xe1   :  { %v505_v50 = vmax.f32 %v489_v45, 0.0  ;;  %v490_v51 = vadd.f32 %v474_v46, %v247_v43  ;;  %v614_v52 = vpop.f32.mrb[4].mxu0 }
  0xe2   :  { %v503_v53 = vmax.f32 %v487_v48, 0.0  ;;  %v488_v54 = vadd.f32 %v472_v49, %v245_v47  ;;  %v227_v55 = vmul.f32 %v614_v52, %v808_v20  ;;  %v632_v56 = vpop.f32.mrb[4].mxu1  ;;  %v167_v57 = vpop.f32.mrb[5].mxu0 }
  0xe3   :  { %522 = vst.msk [vmem:[#allocation2 + $0x10] sm:$0xff] %vm519_vm2, %v505_v50  ;;  %v506_v58 = vmax.f32 %v490_v51, 0.0  ;;  %v454_v59 = vmul.f32 %v632_v56, %v813_v21  ;;  %v225_v60 = vmul.f32 %v808_v20, %v167_v57  ;;  %v394_v61 = vpop.f32.mrb[5].mxu1  ;;  %v615_v62 = vpop.f32.mrb[6].mxu0 }
  0xe4   :  { %520 = vst.msk [vmem:[#allocation2] sm:$0xff] %vm519_vm2, %v503_v53  ;;  %v504_v63 = vmax.f32 %v488_v54, 0.0  ;;  %v250_v0 = vadd.f32 %v818_v23, %v227_v55  ;;  %v452_v1 = vmul.f32 %v813_v21, %v394_v61  ;;  %v228_v2 = vmul.f32 %v615_v62, %v808_v20  ;;  %v633_v3 = vpop.f32.mrb[6].mxu1  ;;  %v170_v4 = vpop.f32.mrb[7].mxu0 }
  0xe5   :  { %523 = vst.msk [vmem:[#allocation2 + $0x18] sm:$0xff] %vm519_vm2, %v506_v58  ;;  %v477_v5 = vadd.f32 %v824_v26, %v454_v59  ;;  %v248_v6 = vadd.f32 %v818_v23, %v225_v60  ;;  %v455_v7 = vmul.f32 %v633_v3, %v813_v21  ;;  %v226_v8 = vmul.f32 %v808_v20, %v170_v4  ;;  %v397_v9 = vpop.f32.mrb[7].mxu1 }
  0xe6   :  { %521 = vst.msk [vmem:[#allocation2 + $0x8] sm:$0xff] %vm519_vm2, %v504_v63  ;;  %v475_v10 = vadd.f32 %v824_v26, %v452_v1  ;;  %v251_v11 = vadd.f32 %v818_v23, %v228_v2  ;;  %v453_v12 = vmul.f32 %v813_v21, %v397_v9 }
  0xe7   :  { %v493_v13 = vadd.f32 %v477_v5, %v250_v0  ;;  %v478_v14 = vadd.f32 %v824_v26, %v455_v7  ;;  %v249_v15 = vadd.f32 %v818_v23, %v226_v8 }
  0xe8   :  { %v491_v16 = vadd.f32 %v475_v10, %v248_v6  ;;  %v476_v17 = vadd.f32 %v824_v26, %v453_v12 }
  0xe9   :  { %v509_v18 = vmax.f32 %v493_v13, 0.0  ;;  %v494_v19 = vadd.f32 %v478_v14, %v251_v11  ;;  %v618_v22 = vpop.f32.mrb[8].mxu0 }
  0xea   :  { %v507_v24 = vmax.f32 %v491_v16, 0.0  ;;  %v492_v25 = vadd.f32 %v476_v17, %v249_v15  ;;  %v231_v27 = vmul.f32 %v618_v22, %v808_v20  ;;  %v636_v28 = vpop.f32.mrb[8].mxu1  ;;  %v183_v29 = vpop.f32.mrb[9].mxu0 }
  0xeb   :  { %526 = vst.msk [vmem:[#allocation2 + $0x30] sm:$0xff] %vm519_vm2, %v509_v18  ;;  %v510_v30 = vmax.f32 %v494_v19, 0.0  ;;  %v458_v31 = vmul.f32 %v636_v28, %v813_v21  ;;  %v229_v32 = vmul.f32 %v808_v20, %v183_v29  ;;  %v410_v33 = vpop.f32.mrb[9].mxu1  ;;  %v619_v34 = vpop.f32.mrb[10].mxu0 }
  0xec   :  { %524 = vst.msk [vmem:[#allocation2 + $0x20] sm:$0xff] %vm519_vm2, %v507_v24  ;;  %v508_v35 = vmax.f32 %v492_v25, 0.0  ;;  %v254_v36 = vadd.f32 %v818_v23, %v231_v27  ;;  %v456_v37 = vmul.f32 %v813_v21, %v410_v33  ;;  %v232_v38 = vmul.f32 %v619_v34, %v808_v20  ;;  %v637_v39 = vpop.f32.mrb[10].mxu1  ;;  %v186_v40 = vpop.f32.mrb[11].mxu0 }
  0xed   :  { %527 = vst.msk [vmem:[#allocation2 + $0x38] sm:$0xff] %vm519_vm2, %v510_v30  ;;  %v481_v41 = vadd.f32 %v824_v26, %v458_v31  ;;  %v252_v42 = vadd.f32 %v818_v23, %v229_v32  ;;  %v459_v43 = vmul.f32 %v637_v39, %v813_v21  ;;  %v230_v44 = vmul.f32 %v808_v20, %v186_v40  ;;  %v413_v45 = vpop.f32.mrb[11].mxu1 }
  0xee   :  { %525 = vst.msk [vmem:[#allocation2 + $0x28] sm:$0xff] %vm519_vm2, %v508_v35  ;;  %v479_v46 = vadd.f32 %v824_v26, %v456_v37  ;;  %v255_v47 = vadd.f32 %v818_v23, %v232_v38  ;;  %v457_v48 = vmul.f32 %v813_v21, %v413_v45 }
  0xef   :  { %v497_v49 = vadd.f32 %v481_v41, %v254_v36  ;;  %v482_v50 = vadd.f32 %v824_v26, %v459_v43  ;;  %v253_v51 = vadd.f32 %v818_v23, %v230_v44 }
  0xf0   :  { %v495_v52 = vadd.f32 %v479_v46, %v252_v42  ;;  %v480_v53 = vadd.f32 %v824_v26, %v457_v48 }
  0xf1   :  { %v513_v54 = vmax.f32 %v497_v49, 0.0  ;;  %v498_v55 = vadd.f32 %v482_v50, %v255_v47  ;;  %v622_v56 = vpop.f32.mrb[12].mxu0 }
  0xf2   :  { %v511_v57 = vmax.f32 %v495_v52, 0.0  ;;  %v496_v58 = vadd.f32 %v480_v53, %v253_v51  ;;  %v235_v59 = vmul.f32 %v622_v56, %v808_v20  ;;  %v640_v60 = vpop.f32.mrb[12].mxu1  ;;  %v199_v61 = vpop.f32.mrb[13].mxu0 }
  0xf3   :  { %530 = vst.msk [vmem:[#allocation2 + $0x50] sm:$0xff] %vm519_vm2, %v513_v54  ;;  %v514_v62 = vmax.f32 %v498_v55, 0.0  ;;  %v462_v63 = vmul.f32 %v640_v60, %v813_v21  ;;  %v233_v0 = vmul.f32 %v808_v20, %v199_v61  ;;  %v426_v1 = vpop.f32.mrb[13].mxu1  ;;  %v623_v2 = vpop.f32.mrb[14].mxu0 }
  0xf4   :  { %528 = vst.msk [vmem:[#allocation2 + $0x40] sm:$0xff] %vm519_vm2, %v511_v57  ;;  %v512_v3 = vmax.f32 %v496_v58, 0.0  ;;  %v258_v4 = vadd.f32 %v818_v23, %v235_v59  ;;  %v460_v5 = vmul.f32 %v813_v21, %v426_v1  ;;  %v236_v6 = vmul.f32 %v623_v2, %v808_v20  ;;  %v641_v7 = vpop.f32.mrb[14].mxu1  ;;  %v202_v8 = vpop.f32.mrb[15].mxu0 }
  0xf5   :  { %531 = vst.msk [vmem:[#allocation2 + $0x58] sm:$0xff] %vm519_vm2, %v514_v62  ;;  %v485_v9 = vadd.f32 %v824_v26, %v462_v63  ;;  %v256_v10 = vadd.f32 %v818_v23, %v233_v0  ;;  %v463_v11 = vmul.f32 %v641_v7, %v813_v21  ;;  %v234_v12 = vmul.f32 %v808_v20, %v202_v8  ;;  %v429_v13 = vpop.f32.mrb[15].mxu1 }
  0xf6   :  { %529 = vst.msk [vmem:[#allocation2 + $0x48] sm:$0xff] %vm519_vm2, %v512_v3  ;;  %v483_v14 = vadd.f32 %v824_v26, %v460_v5  ;;  %v259_v15 = vadd.f32 %v818_v23, %v236_v6  ;;  %v461_v16 = vmul.f32 %v813_v21, %v429_v13 }
  0xf7   :  { %v501_v17 = vadd.f32 %v485_v9, %v258_v4  ;;  %v486_v18 = vadd.f32 %v824_v26, %v463_v11  ;;  %v257_v19 = vadd.f32 %v818_v23, %v234_v12 }
  0xf8   :  { %v499_v22 = vadd.f32 %v483_v14, %v256_v10  ;;  %v484_v24 = vadd.f32 %v824_v26, %v461_v16 }
  0xf9   :  { %v517_v20 = vmax.f32 %v501_v17, 0.0  ;;  %v502_v25 = vadd.f32 %v486_v18, %v259_v15 }
  0xfa   :  { %v515_v27 = vmax.f32 %v499_v22, 0.0  ;;  %v500_v28 = vadd.f32 %v484_v24, %v257_v19 }
  0xfb   :  { %534 = vst.msk [vmem:[#allocation2 + $0x70] sm:$0xff] %vm519_vm2, %v517_v20  ;;  %v518_v29 = vmax.f32 %v502_v25, 0.0 }
  0xfc   :  { %532 = vst.msk [vmem:[#allocation2 + $0x60] sm:$0xff] %vm519_vm2, %v515_v27  ;;  %v516_v21 = vmax.f32 %v500_v28, 0.0 }
  0xfd   :  { %535 = vst.msk [vmem:[#allocation2 + $0x78] sm:$0xff] %vm519_vm2, %v518_v29 }
  0xfe   :  { %533 = vst.msk [vmem:[#allocation2 + $0x68] sm:$0xff] %vm519_vm2, %v516_v21 }
  0xff   :  { %674 = shalt.err (!%p671_p4)
}
 0x100   :  { %s675_s22 = scalar_lea.hbm %s925_s8, 2048 }
 0x101   :  { %p676_p5 = scmp.ne.s32.totalorder %s925_s8, %s675_s22  ;;  %p679_p6 = scmp.lt.u32.totalorder %s675_s22, %s925_s8 }
 0x103   :  { %p681_p7 = pnand %p679_p6, %p676_p5 }
 0x105   :  { %684 = shalt.err (!%p681_p7)
}
 0x106   :  { %s688_s27 = smov 128   ;;  %s689_s28 = smov 8  }
 0x107   :  { %547 = dma.vmem_to_hbm [thread:$0]  %s542_s4, 2048, %s925_s8, [#allocation3], %s688_s27, %s688_s27, %s689_s28  }
 0x108   :  { %685 = dma.done.wait [#allocation3], 2048  }
 0x109   :  { %686 = vsyncadd [#allocation3], 4294965248 }
 0x10a   :  { %551 = vsyncpa [#allocation3], 1 }

</bundles_post_ra>
